<compile_context>
chip_gen: v5e
topology: v5e:2x2
jax: 0.10.0
libtpu: 0.0.40
codegen_flags: <defaults>
</compile_context>

<pallas_src>
import jax
import jax.numpy as jnp
from jax.experimental import pallas as pl
from jax.experimental.pallas import tpu as pltpu

SCREEN_SIZE = 32            # input spatial size this kernel is specialized to
_C1, _C2 = 16, 32           # conv1 / conv2 output channels
_OUT_DIM = _C2 * 2 * 2      # 128 = PyTorch conv_out_dim for a 32x32 screen
_G = SCREEN_SIZE // 4       # 8x8 grid after space-to-depth by the conv1 stride
# conv2 reads conv1 cells (gh, gw) in [0, 6); each needs conv1 taps up to
# row offset _G + 1, so conv1 must be evaluated at grid rows q = 0 .. _QY-1.
_QY = (5 * _G + 5) + (_G + 1) + 1   # = 55


def _fused_cnn_kernel(xs_ref, w1_ref, b1_ref, w2_ref, b2_ref, o_ref):
    # xs_ref : [64*bt, Cin*16]  rows = (grid cell q, image b), feat = (c, rh, rw), bf16
    # w1_ref : [Cin*16, 64]     conv1, all 4 (dh, dw) taps packed along N, bf16
    # b1_ref : [1, 16]          conv1 bias, f32
    # w2_ref : [36, 16, 128]    per-source-cell conv2 weights, flatten permutation
    #                           folded into the (zero-padded) columns, bf16
    # b2_ref : [1, 128]         conv2 bias repeated into the flatten layout, f32
    # o_ref  : [bt, 128]        flattened output block (lane dense), f32
    bt = o_ref.shape[0]

    # ---- conv1: one MXU matmul computes all 4 taps at every needed cell ----
    y = jnp.dot(xs_ref[0:_QY * bt, :], w1_ref[...],
                preferred_element_type=jnp.float32)          # [55*bt, 4*16]
    y0 = y[:, 0:16]      # tap (dh=0, dw=0)
    y1 = y[:, 16:32]     # tap (dh=0, dw=1)
    y2 = y[:, 32:48]     # tap (dh=1, dw=0)
    y3 = y[:, 48:64]     # tap (dh=1, dw=1)
    b1 = b1_ref[...]

    # ---- conv1 tanh + conv2 + tanh + flatten, valid positions only ----------
    acc = jnp.zeros((bt, _OUT_DIM), jnp.float32)
    for gh in range(6):                 # the 6x6 conv1 cells conv2 ever reads
        for gw in range(6):
            q = gh * _G + gw
            pre = (y0[q * bt:(q + 1) * bt, :]
                   + y1[(q + 1) * bt:(q + 2) * bt, :]
                   + y2[(q + _G) * bt:(q + _G + 1) * bt, :]
                   + y3[(q + _G + 1) * bt:(q + _G + 2) * bt, :])
            a1 = jnp.tanh(pre + b1).astype(jnp.bfloat16)      # [bt, 16]
            acc = acc + jnp.dot(a1, w2_ref[gh * 6 + gw],
                                preferred_element_type=jnp.float32)
    o_ref[...] = jnp.tanh(acc + b2_ref[...])


def init_params(in_channels, key):
    k1, k2, k3, k4 = jax.random.split(key, 4)
    w1 = jax.random.normal(k1, (_C1, in_channels, 8, 8), jnp.float32) * (
        1.0 / jnp.sqrt(in_channels * 8 * 8))
    b1 = jax.random.normal(k2, (_C1,), jnp.float32) * 0.01
    w2 = jax.random.normal(k3, (_C2, _C1, 4, 4), jnp.float32) * (
        1.0 / jnp.sqrt(_C1 * 4 * 4))
    b2 = jax.random.normal(k4, (_C2,), jnp.float32) * 0.01
    return {"w1": w1, "b1": b1, "w2": w2, "b2": b2}


@jax.jit
def base_cnn_forward(params, x):
    """x: [N, Cin, 32, 32] (NCHW f32) -> [N, 128] (PyTorch flatten (c, h, w))."""
    N, Cin, H, W = x.shape
    assert H == SCREEN_SIZE and W == SCREEN_SIZE, "kernel is specialized to 32x32 screens"
    F1 = Cin * 16

    # images per grid step: multiple of 8, <= 64, >= 2 steps whenever possible
    steps = max(2 if N > 8 else 1, -(-N // 64))
    bt = 8 * (-(-N // (8 * steps)))
    Np = steps * bt

    # ---- one-off XLA prep: pad batch, space-to-depth relayout (rows ordered
    # (block, grid cell, image)), bf16 cast, fold/permute the weights ---------
    xp = jnp.pad(x.astype(jnp.float32), ((0, Np - N), (0, 0), (0, 0), (0, 0)))
    xs = (xp.reshape(steps, bt, Cin, _G, 4, _G, 4)
          .transpose(0, 3, 5, 1, 2, 4, 6)            # (blk, gh, gw, b, c, rh, rw)
          .reshape(steps * 64 * bt, F1)
          .astype(jnp.bfloat16))

    # conv1 weights: tap (dh, dw), rows (c, rh, rw); packed along N -> [F1, 64]
    w1p = (params["w1"].reshape(_C1, Cin, 2, 4, 2, 4)
           .transpose(2, 4, 1, 3, 5, 0)               # (dh, dw, c, rh, rw, cout)
           .reshape(4, F1, _C1))
    w1n = w1p.transpose(1, 0, 2).reshape(F1, 4 * _C1).astype(jnp.bfloat16)
    b1 = params["b1"].reshape(1, _C1).astype(jnp.float32)

    # conv2 weights per source cell (gh, gw) of the 6x6 region conv2 touches,
    # with the PyTorch (c, h, w) flatten permutation folded into the columns.
    w2t = params["w2"].transpose(2, 3, 1, 0)          # (kh, kw, c1, cout)
    w2e = jnp.zeros((6, 6, _C1, _OUT_DIM), jnp.float32)
    for oh in range(2):
        for ow in range(2):
            p = oh * 2 + ow
            w2e = w2e.at[2 * oh:2 * oh + 4, 2 * ow:2 * ow + 4, :, p::4].add(w2t)
    w2e = w2e.reshape(36, _C1, _OUT_DIM).astype(jnp.bfloat16)
    b2 = jnp.repeat(params["b2"], 4).reshape(1, _OUT_DIM).astype(jnp.float32)

    out = pl.pallas_call(
        _fused_cnn_kernel,
        out_shape=jax.ShapeDtypeStruct((Np, _OUT_DIM), jnp.float32),
        grid=(steps,),
        in_specs=[
            pl.BlockSpec((64 * bt, F1), lambda g: (g, 0)),
            pl.BlockSpec((F1, 4 * _C1), lambda g: (0, 0)),
            pl.BlockSpec((1, _C1), lambda g: (0, 0)),
            pl.BlockSpec((36, _C1, _OUT_DIM), lambda g: (0, 0, 0)),
            pl.BlockSpec((1, _OUT_DIM), lambda g: (0, 0)),
        ],
        out_specs=pl.BlockSpec((bt, _OUT_DIM), lambda g: (g, 0)),
        compiler_params=pltpu.CompilerParams(
            dimension_semantics=("parallel",),
            vmem_limit_bytes=32 * 1024 * 1024),
    )(xs, w1n, b1, w2e, b2)
    return out[:N]


# ---------------------------------------------------------------------------
# Reference (pure JAX / XLA conv) for the correctness check
# ---------------------------------------------------------------------------
def _ref_forward(params, x):
    dn1 = jax.lax.conv_dimension_numbers(x.shape, params["w1"].shape,
                                         ("NCHW", "OIHW", "NCHW"))
    h1 = jax.lax.conv_general_dilated(x, params["w1"], (4, 4), "VALID",
                                      dimension_numbers=dn1)
    h1 = jnp.tanh(h1 + params["b1"][None, :, None, None])
    dn2 = jax.lax.conv_dimension_numbers(h1.shape, params["w2"].shape,
                                         ("NCHW", "OIHW", "NCHW"))
    h2 = jax.lax.conv_general_dilated(h1, params["w2"], (2, 2), "VALID",
                                      dimension_numbers=dn2)
    h2 = jnp.tanh(h2 + params["b2"][None, :, None, None])
    return h2.reshape(h2.shape[0], -1)


if __name__ == "__main__":
    in_channels = 4
    batch = 12        # -> 2 grid steps of 8 (padded) images: exercises the grid

    key = jax.random.PRNGKey(0)
    pkey, xkey = jax.random.split(key)
    params = init_params(in_channels, pkey)
    x = jax.random.normal(xkey, (batch, in_channels, SCREEN_SIZE, SCREEN_SIZE),
                          jnp.float32)

    out = jax.block_until_ready(base_cnn_forward(params, x))
    ref = jax.block_until_ready(_ref_forward(params, x))

    assert out.shape == (batch, _OUT_DIM), out.shape
    err = float(jnp.max(jnp.abs(out - ref)))
    # bf16 MXU inputs (f32 accumulation) => small slack vs the pure-f32 reference.
    assert err < 5e-2, err
    print("KERNEL_OK")
</pallas_src>

<mosaic_0001>
module attributes {stable_mosaic.version = 11 : i64} {
  func.func @_fused_cnn_kernel(%arg0: i32, %arg1: memref<512x64xbf16, #tpu.memory_space<vmem>>, %arg2: memref<64x64xbf16, #tpu.memory_space<vmem>>, %arg3: memref<1x16xf32, #tpu.memory_space<vmem>>, %arg4: memref<36x16x128xbf16, #tpu.memory_space<vmem>>, %arg5: memref<1x128xf32, #tpu.memory_space<vmem>>, %arg6: memref<8x128xf32, #tpu.memory_space<vmem>>) attributes {dimension_semantics = [#tpu.dimension_semantics<parallel>], iteration_bounds = array<i64: 2>, scalar_prefetch = 0 : i64, scratch_operands = 0 : i64, tpu.core_type = #tpu.core_type<tc>, window_params = [{transform_indices = @transform_0, window_bounds = array<i64: 512, 64>}, {pipeline_mode = #tpu.pipeline_mode<synchronous>, transform_indices = @transform_1, window_bounds = array<i64: 64, 64>}, {pipeline_mode = #tpu.pipeline_mode<synchronous>, transform_indices = @transform_2, window_bounds = array<i64: 1, 16>}, {pipeline_mode = #tpu.pipeline_mode<synchronous>, transform_indices = @transform_3, window_bounds = array<i64: 36, 16, 128>}, {pipeline_mode = #tpu.pipeline_mode<synchronous>, transform_indices = @transform_4, window_bounds = array<i64: 1, 128>}, {transform_indices = @transform_5, window_bounds = array<i64: 8, 128>}]} {
    %c0 = arith.constant 0 : index
    %c0_0 = arith.constant 0 : index
    %0 = vector.load %arg1[%c0, %c0_0] : memref<512x64xbf16, #tpu.memory_space<vmem>>, vector<440x64xbf16>
    %c0_1 = arith.constant 0 : index
    %c0_2 = arith.constant 0 : index
    %1 = vector.load %arg2[%c0_1, %c0_2] : memref<64x64xbf16, #tpu.memory_space<vmem>>, vector<64x64xbf16>
    %cst = arith.constant dense<0.000000e+00> : vector<440x64xf32>
    %2 = tpu.matmul %0, %1, %cst {dimension_numbers = #tpu.dot_dimension_numbers<[1], [0], [0], [1], [0, 0, 1, 1], [], []>} : vector<440x64xbf16>, vector<64x64xbf16>, vector<440x64xf32> -> vector<440x64xf32>
    %3 = vector.extract_strided_slice %2 {offsets = [0, 0], sizes = [440, 16], strides = [1, 1]} : vector<440x64xf32> to vector<440x16xf32>
    %4 = vector.extract_strided_slice %2 {offsets = [0, 16], sizes = [440, 16], strides = [1, 1]} : vector<440x64xf32> to vector<440x16xf32>
    %5 = vector.extract_strided_slice %2 {offsets = [0, 32], sizes = [440, 16], strides = [1, 1]} : vector<440x64xf32> to vector<440x16xf32>
    %6 = vector.extract_strided_slice %2 {offsets = [0, 48], sizes = [440, 16], strides = [1, 1]} : vector<440x64xf32> to vector<440x16xf32>
    %c0_3 = arith.constant 0 : index
    %c0_4 = arith.constant 0 : index
    %7 = vector.load %arg3[%c0_3, %c0_4] : memref<1x16xf32, #tpu.memory_space<vmem>>, vector<1x16xf32>
    %cst_5 = arith.constant 0.000000e+00 : f32
    %8 = vector.broadcast %cst_5 : f32 to vector<8x128xf32>
    %9 = vector.extract_strided_slice %3 {offsets = [0, 0], sizes = [8, 16], strides = [1, 1]} : vector<440x16xf32> to vector<8x16xf32>
    %10 = vector.extract_strided_slice %4 {offsets = [8, 0], sizes = [8, 16], strides = [1, 1]} : vector<440x16xf32> to vector<8x16xf32>
    %11 = arith.addf %9, %10 : vector<8x16xf32>
    %12 = vector.extract_strided_slice %5 {offsets = [64, 0], sizes = [8, 16], strides = [1, 1]} : vector<440x16xf32> to vector<8x16xf32>
    %13 = arith.addf %11, %12 : vector<8x16xf32>
    %14 = vector.extract_strided_slice %6 {offsets = [72, 0], sizes = [8, 16], strides = [1, 1]} : vector<440x16xf32> to vector<8x16xf32>
    %15 = arith.addf %13, %14 : vector<8x16xf32>
    %16 = vector.broadcast %7 : vector<1x16xf32> to vector<8x16xf32>
    %17 = arith.addf %15, %16 : vector<8x16xf32>
    %18 = math.tanh %17 : vector<8x16xf32>
    %19 = arith.truncf %18 : vector<8x16xf32> to vector<8x16xbf16>
    %c0_6 = arith.constant 0 : index
    %c0_7 = arith.constant 0 : index
    %c0_8 = arith.constant 0 : index
    %20 = vector.load %arg4[%c0_6, %c0_7, %c0_8] : memref<36x16x128xbf16, #tpu.memory_space<vmem>>, vector<1x16x128xbf16>
    %21 = vector.shape_cast %20 : vector<1x16x128xbf16> to vector<16x128xbf16>
    %cst_9 = arith.constant dense<0.000000e+00> : vector<8x128xf32>
    %22 = tpu.matmul %19, %21, %cst_9 {dimension_numbers = #tpu.dot_dimension_numbers<[1], [0], [0], [1], [0, 0, 1, 1], [], []>} : vector<8x16xbf16>, vector<16x128xbf16>, vector<8x128xf32> -> vector<8x128xf32>
    %23 = arith.addf %8, %22 : vector<8x128xf32>
    %24 = vector.extract_strided_slice %3 {offsets = [8, 0], sizes = [8, 16], strides = [1, 1]} : vector<440x16xf32> to vector<8x16xf32>
    %25 = vector.extract_strided_slice %4 {offsets = [16, 0], sizes = [8, 16], strides = [1, 1]} : vector<440x16xf32> to vector<8x16xf32>
    %26 = arith.addf %24, %25 : vector<8x16xf32>
    %27 = vector.extract_strided_slice %5 {offsets = [72, 0], sizes = [8, 16], strides = [1, 1]} : vector<440x16xf32> to vector<8x16xf32>
    %28 = arith.addf %26, %27 : vector<8x16xf32>
    %29 = vector.extract_strided_slice %6 {offsets = [80, 0], sizes = [8, 16], strides = [1, 1]} : vector<440x16xf32> to vector<8x16xf32>
    %30 = arith.addf %28, %29 : vector<8x16xf32>
    %31 = vector.broadcast %7 : vector<1x16xf32> to vector<8x16xf32>
    %32 = arith.addf %30, %31 : vector<8x16xf32>
    %33 = math.tanh %32 : vector<8x16xf32>
    %34 = arith.truncf %33 : vector<8x16xf32> to vector<8x16xbf16>
    %c1 = arith.constant 1 : index
    %c0_10 = arith.constant 0 : index
    %c0_11 = arith.constant 0 : index
    %35 = vector.load %arg4[%c1, %c0_10, %c0_11] : memref<36x16x128xbf16, #tpu.memory_space<vmem>>, vector<1x16x128xbf16>
    %36 = vector.shape_cast %35 : vector<1x16x128xbf16> to vector<16x128xbf16>
    %cst_12 = arith.constant dense<0.000000e+00> : vector<8x128xf32>
    %37 = tpu.matmul %34, %36, %cst_12 {dimension_numbers = #tpu.dot_dimension_numbers<[1], [0], [0], [1], [0, 0, 1, 1], [], []>} : vector<8x16xbf16>, vector<16x128xbf16>, vector<8x128xf32> -> vector<8x128xf32>
    %38 = arith.addf %23, %37 : vector<8x128xf32>
    %39 = vector.extract_strided_slice %3 {offsets = [16, 0], sizes = [8, 16], strides = [1, 1]} : vector<440x16xf32> to vector<8x16xf32>
    %40 = vector.extract_strided_slice %4 {offsets = [24, 0], sizes = [8, 16], strides = [1, 1]} : vector<440x16xf32> to vector<8x16xf32>
    %41 = arith.addf %39, %40 : vector<8x16xf32>
    %42 = vector.extract_strided_slice %5 {offsets = [80, 0], sizes = [8, 16], strides = [1, 1]} : vector<440x16xf32> to vector<8x16xf32>
    %43 = arith.addf %41, %42 : vector<8x16xf32>
    %44 = vector.extract_strided_slice %6 {offsets = [88, 0], sizes = [8, 16], strides = [1, 1]} : vector<440x16xf32> to vector<8x16xf32>
    %45 = arith.addf %43, %44 : vector<8x16xf32>
    %46 = vector.broadcast %7 : vector<1x16xf32> to vector<8x16xf32>
    %47 = arith.addf %45, %46 : vector<8x16xf32>
    %48 = math.tanh %47 : vector<8x16xf32>
    %49 = arith.truncf %48 : vector<8x16xf32> to vector<8x16xbf16>
    %c2 = arith.constant 2 : index
    %c0_13 = arith.constant 0 : index
    %c0_14 = arith.constant 0 : index
    %50 = vector.load %arg4[%c2, %c0_13, %c0_14] : memref<36x16x128xbf16, #tpu.memory_space<vmem>>, vector<1x16x128xbf16>
    %51 = vector.shape_cast %50 : vector<1x16x128xbf16> to vector<16x128xbf16>
    %cst_15 = arith.constant dense<0.000000e+00> : vector<8x128xf32>
    %52 = tpu.matmul %49, %51, %cst_15 {dimension_numbers = #tpu.dot_dimension_numbers<[1], [0], [0], [1], [0, 0, 1, 1], [], []>} : vector<8x16xbf16>, vector<16x128xbf16>, vector<8x128xf32> -> vector<8x128xf32>
    %53 = arith.addf %38, %52 : vector<8x128xf32>
    %54 = vector.extract_strided_slice %3 {offsets = [24, 0], sizes = [8, 16], strides = [1, 1]} : vector<440x16xf32> to vector<8x16xf32>
    %55 = vector.extract_strided_slice %4 {offsets = [32, 0], sizes = [8, 16], strides = [1, 1]} : vector<440x16xf32> to vector<8x16xf32>
    %56 = arith.addf %54, %55 : vector<8x16xf32>
    %57 = vector.extract_strided_slice %5 {offsets = [88, 0], sizes = [8, 16], strides = [1, 1]} : vector<440x16xf32> to vector<8x16xf32>
    %58 = arith.addf %56, %57 : vector<8x16xf32>
    %59 = vector.extract_strided_slice %6 {offsets = [96, 0], sizes = [8, 16], strides = [1, 1]} : vector<440x16xf32> to vector<8x16xf32>
    %60 = arith.addf %58, %59 : vector<8x16xf32>
    %61 = vector.broadcast %7 : vector<1x16xf32> to vector<8x16xf32>
    %62 = arith.addf %60, %61 : vector<8x16xf32>
    %63 = math.tanh %62 : vector<8x16xf32>
    %64 = arith.truncf %63 : vector<8x16xf32> to vector<8x16xbf16>
    %c3 = arith.constant 3 : index
    %c0_16 = arith.constant 0 : index
    %c0_17 = arith.constant 0 : index
    %65 = vector.load %arg4[%c3, %c0_16, %c0_17] : memref<36x16x128xbf16, #tpu.memory_space<vmem>>, vector<1x16x128xbf16>
    %66 = vector.shape_cast %65 : vector<1x16x128xbf16> to vector<16x128xbf16>
    %cst_18 = arith.constant dense<0.000000e+00> : vector<8x128xf32>
    %67 = tpu.matmul %64, %66, %cst_18 {dimension_numbers = #tpu.dot_dimension_numbers<[1], [0], [0], [1], [0, 0, 1, 1], [], []>} : vector<8x16xbf16>, vector<16x128xbf16>, vector<8x128xf32> -> vector<8x128xf32>
    %68 = arith.addf %53, %67 : vector<8x128xf32>
    %69 = vector.extract_strided_slice %3 {offsets = [32, 0], sizes = [8, 16], strides = [1, 1]} : vector<440x16xf32> to vector<8x16xf32>
    %70 = vector.extract_strided_slice %4 {offsets = [40, 0], sizes = [8, 16], strides = [1, 1]} : vector<440x16xf32> to vector<8x16xf32>
    %71 = arith.addf %69, %70 : vector<8x16xf32>
    %72 = vector.extract_strided_slice %5 {offsets = [96, 0], sizes = [8, 16], strides = [1, 1]} : vector<440x16xf32> to vector<8x16xf32>
    %73 = arith.addf %71, %72 : vector<8x16xf32>
    %74 = vector.extract_strided_slice %6 {offsets = [104, 0], sizes = [8, 16], strides = [1, 1]} : vector<440x16xf32> to vector<8x16xf32>
    %75 = arith.addf %73, %74 : vector<8x16xf32>
    %76 = vector.broadcast %7 : vector<1x16xf32> to vector<8x16xf32>
    %77 = arith.addf %75, %76 : vector<8x16xf32>
    %78 = math.tanh %77 : vector<8x16xf32>
    %79 = arith.truncf %78 : vector<8x16xf32> to vector<8x16xbf16>
    %c4 = arith.constant 4 : index
    %c0_19 = arith.constant 0 : index
    %c0_20 = arith.constant 0 : index
    %80 = vector.load %arg4[%c4, %c0_19, %c0_20] : memref<36x16x128xbf16, #tpu.memory_space<vmem>>, vector<1x16x128xbf16>
    %81 = vector.shape_cast %80 : vector<1x16x128xbf16> to vector<16x128xbf16>
    %cst_21 = arith.constant dense<0.000000e+00> : vector<8x128xf32>
    %82 = tpu.matmul %79, %81, %cst_21 {dimension_numbers = #tpu.dot_dimension_numbers<[1], [0], [0], [1], [0, 0, 1, 1], [], []>} : vector<8x16xbf16>, vector<16x128xbf16>, vector<8x128xf32> -> vector<8x128xf32>
    %83 = arith.addf %68, %82 : vector<8x128xf32>
    %84 = vector.extract_strided_slice %3 {offsets = [40, 0], sizes = [8, 16], strides = [1, 1]} : vector<440x16xf32> to vector<8x16xf32>
    %85 = vector.extract_strided_slice %4 {offsets = [48, 0], sizes = [8, 16], strides = [1, 1]} : vector<440x16xf32> to vector<8x16xf32>
    %86 = arith.addf %84, %85 : vector<8x16xf32>
    %87 = vector.extract_strided_slice %5 {offsets = [104, 0], sizes = [8, 16], strides = [1, 1]} : vector<440x16xf32> to vector<8x16xf32>
    %88 = arith.addf %86, %87 : vector<8x16xf32>
    %89 = vector.extract_strided_slice %6 {offsets = [112, 0], sizes = [8, 16], strides = [1, 1]} : vector<440x16xf32> to vector<8x16xf32>
    %90 = arith.addf %88, %89 : vector<8x16xf32>
    %91 = vector.broadcast %7 : vector<1x16xf32> to vector<8x16xf32>
    %92 = arith.addf %90, %91 : vector<8x16xf32>
    %93 = math.tanh %92 : vector<8x16xf32>
    %94 = arith.truncf %93 : vector<8x16xf32> to vector<8x16xbf16>
    %c5 = arith.constant 5 : index
    %c0_22 = arith.constant 0 : index
    %c0_23 = arith.constant 0 : index
    %95 = vector.load %arg4[%c5, %c0_22, %c0_23] : memref<36x16x128xbf16, #tpu.memory_space<vmem>>, vector<1x16x128xbf16>
    %96 = vector.shape_cast %95 : vector<1x16x128xbf16> to vector<16x128xbf16>
    %cst_24 = arith.constant dense<0.000000e+00> : vector<8x128xf32>
    %97 = tpu.matmul %94, %96, %cst_24 {dimension_numbers = #tpu.dot_dimension_numbers<[1], [0], [0], [1], [0, 0, 1, 1], [], []>} : vector<8x16xbf16>, vector<16x128xbf16>, vector<8x128xf32> -> vector<8x128xf32>
    %98 = arith.addf %83, %97 : vector<8x128xf32>
    %99 = vector.extract_strided_slice %3 {offsets = [64, 0], sizes = [8, 16], strides = [1, 1]} : vector<440x16xf32> to vector<8x16xf32>
    %100 = vector.extract_strided_slice %4 {offsets = [72, 0], sizes = [8, 16], strides = [1, 1]} : vector<440x16xf32> to vector<8x16xf32>
    %101 = arith.addf %99, %100 : vector<8x16xf32>
    %102 = vector.extract_strided_slice %5 {offsets = [128, 0], sizes = [8, 16], strides = [1, 1]} : vector<440x16xf32> to vector<8x16xf32>
    %103 = arith.addf %101, %102 : vector<8x16xf32>
    %104 = vector.extract_strided_slice %6 {offsets = [136, 0], sizes = [8, 16], strides = [1, 1]} : vector<440x16xf32> to vector<8x16xf32>
    %105 = arith.addf %103, %104 : vector<8x16xf32>
    %106 = vector.broadcast %7 : vector<1x16xf32> to vector<8x16xf32>
    %107 = arith.addf %105, %106 : vector<8x16xf32>
    %108 = math.tanh %107 : vector<8x16xf32>
    %109 = arith.truncf %108 : vector<8x16xf32> to vector<8x16xbf16>
    %c6 = arith.constant 6 : index
    %c0_25 = arith.constant 0 : index
    %c0_26 = arith.constant 0 : index
    %110 = vector.load %arg4[%c6, %c0_25, %c0_26] : memref<36x16x128xbf16, #tpu.memory_space<vmem>>, vector<1x16x128xbf16>
    %111 = vector.shape_cast %110 : vector<1x16x128xbf16> to vector<16x128xbf16>
    %cst_27 = arith.constant dense<0.000000e+00> : vector<8x128xf32>
    %112 = tpu.matmul %109, %111, %cst_27 {dimension_numbers = #tpu.dot_dimension_numbers<[1], [0], [0], [1], [0, 0, 1, 1], [], []>} : vector<8x16xbf16>, vector<16x128xbf16>, vector<8x128xf32> -> vector<8x128xf32>
    %113 = arith.addf %98, %112 : vector<8x128xf32>
    %114 = vector.extract_strided_slice %3 {offsets = [72, 0], sizes = [8, 16], strides = [1, 1]} : vector<440x16xf32> to vector<8x16xf32>
    %115 = vector.extract_strided_slice %4 {offsets = [80, 0], sizes = [8, 16], strides = [1, 1]} : vector<440x16xf32> to vector<8x16xf32>
    %116 = arith.addf %114, %115 : vector<8x16xf32>
    %117 = vector.extract_strided_slice %5 {offsets = [136, 0], sizes = [8, 16], strides = [1, 1]} : vector<440x16xf32> to vector<8x16xf32>
    %118 = arith.addf %116, %117 : vector<8x16xf32>
    %119 = vector.extract_strided_slice %6 {offsets = [144, 0], sizes = [8, 16], strides = [1, 1]} : vector<440x16xf32> to vector<8x16xf32>
    %120 = arith.addf %118, %119 : vector<8x16xf32>
    %121 = vector.broadcast %7 : vector<1x16xf32> to vector<8x16xf32>
    %122 = arith.addf %120, %121 : vector<8x16xf32>
    %123 = math.tanh %122 : vector<8x16xf32>
    %124 = arith.truncf %123 : vector<8x16xf32> to vector<8x16xbf16>
    %c7 = arith.constant 7 : index
    %c0_28 = arith.constant 0 : index
    %c0_29 = arith.constant 0 : index
    %125 = vector.load %arg4[%c7, %c0_28, %c0_29] : memref<36x16x128xbf16, #tpu.memory_space<vmem>>, vector<1x16x128xbf16>
    %126 = vector.shape_cast %125 : vector<1x16x128xbf16> to vector<16x128xbf16>
    %cst_30 = arith.constant dense<0.000000e+00> : vector<8x128xf32>
    %127 = tpu.matmul %124, %126, %cst_30 {dimension_numbers = #tpu.dot_dimension_numbers<[1], [0], [0], [1], [0, 0, 1, 1], [], []>} : vector<8x16xbf16>, vector<16x128xbf16>, vector<8x128xf32> -> vector<8x128xf32>
    %128 = arith.addf %113, %127 : vector<8x128xf32>
    %129 = vector.extract_strided_slice %3 {offsets = [80, 0], sizes = [8, 16], strides = [1, 1]} : vector<440x16xf32> to vector<8x16xf32>
    %130 = vector.extract_strided_slice %4 {offsets = [88, 0], sizes = [8, 16], strides = [1, 1]} : vector<440x16xf32> to vector<8x16xf32>
    %131 = arith.addf %129, %130 : vector<8x16xf32>
    %132 = vector.extract_strided_slice %5 {offsets = [144, 0], sizes = [8, 16], strides = [1, 1]} : vector<440x16xf32> to vector<8x16xf32>
    %133 = arith.addf %131, %132 : vector<8x16xf32>
    %134 = vector.extract_strided_slice %6 {offsets = [152, 0], sizes = [8, 16], strides = [1, 1]} : vector<440x16xf32> to vector<8x16xf32>
    %135 = arith.addf %133, %134 : vector<8x16xf32>
    %136 = vector.broadcast %7 : vector<1x16xf32> to vector<8x16xf32>
    %137 = arith.addf %135, %136 : vector<8x16xf32>
    %138 = math.tanh %137 : vector<8x16xf32>
    %139 = arith.truncf %138 : vector<8x16xf32> to vector<8x16xbf16>
    %c8 = arith.constant 8 : index
    %c0_31 = arith.constant 0 : index
    %c0_32 = arith.constant 0 : index
    %140 = vector.load %arg4[%c8, %c0_31, %c0_32] : memref<36x16x128xbf16, #tpu.memory_space<vmem>>, vector<1x16x128xbf16>
    %141 = vector.shape_cast %140 : vector<1x16x128xbf16> to vector<16x128xbf16>
    %cst_33 = arith.constant dense<0.000000e+00> : vector<8x128xf32>
    %142 = tpu.matmul %139, %141, %cst_33 {dimension_numbers = #tpu.dot_dimension_numbers<[1], [0], [0], [1], [0, 0, 1, 1], [], []>} : vector<8x16xbf16>, vector<16x128xbf16>, vector<8x128xf32> -> vector<8x128xf32>
    %143 = arith.addf %128, %142 : vector<8x128xf32>
    %144 = vector.extract_strided_slice %3 {offsets = [88, 0], sizes = [8, 16], strides = [1, 1]} : vector<440x16xf32> to vector<8x16xf32>
    %145 = vector.extract_strided_slice %4 {offsets = [96, 0], sizes = [8, 16], strides = [1, 1]} : vector<440x16xf32> to vector<8x16xf32>
    %146 = arith.addf %144, %145 : vector<8x16xf32>
    %147 = vector.extract_strided_slice %5 {offsets = [152, 0], sizes = [8, 16], strides = [1, 1]} : vector<440x16xf32> to vector<8x16xf32>
    %148 = arith.addf %146, %147 : vector<8x16xf32>
    %149 = vector.extract_strided_slice %6 {offsets = [160, 0], sizes = [8, 16], strides = [1, 1]} : vector<440x16xf32> to vector<8x16xf32>
    %150 = arith.addf %148, %149 : vector<8x16xf32>
    %151 = vector.broadcast %7 : vector<1x16xf32> to vector<8x16xf32>
    %152 = arith.addf %150, %151 : vector<8x16xf32>
    %153 = math.tanh %152 : vector<8x16xf32>
    %154 = arith.truncf %153 : vector<8x16xf32> to vector<8x16xbf16>
    %c9 = arith.constant 9 : index
    %c0_34 = arith.constant 0 : index
    %c0_35 = arith.constant 0 : index
    %155 = vector.load %arg4[%c9, %c0_34, %c0_35] : memref<36x16x128xbf16, #tpu.memory_space<vmem>>, vector<1x16x128xbf16>
    %156 = vector.shape_cast %155 : vector<1x16x128xbf16> to vector<16x128xbf16>
    %cst_36 = arith.constant dense<0.000000e+00> : vector<8x128xf32>
    %157 = tpu.matmul %154, %156, %cst_36 {dimension_numbers = #tpu.dot_dimension_numbers<[1], [0], [0], [1], [0, 0, 1, 1], [], []>} : vector<8x16xbf16>, vector<16x128xbf16>, vector<8x128xf32> -> vector<8x128xf32>
    %158 = arith.addf %143, %157 : vector<8x128xf32>
    %159 = vector.extract_strided_slice %3 {offsets = [96, 0], sizes = [8, 16], strides = [1, 1]} : vector<440x16xf32> to vector<8x16xf32>
    %160 = vector.extract_strided_slice %4 {offsets = [104, 0], sizes = [8, 16], strides = [1, 1]} : vector<440x16xf32> to vector<8x16xf32>
    %161 = arith.addf %159, %160 : vector<8x16xf32>
    %162 = vector.extract_strided_slice %5 {offsets = [160, 0], sizes = [8, 16], strides = [1, 1]} : vector<440x16xf32> to vector<8x16xf32>
    %163 = arith.addf %161, %162 : vector<8x16xf32>
    %164 = vector.extract_strided_slice %6 {offsets = [168, 0], sizes = [8, 16], strides = [1, 1]} : vector<440x16xf32> to vector<8x16xf32>
    %165 = arith.addf %163, %164 : vector<8x16xf32>
    %166 = vector.broadcast %7 : vector<1x16xf32> to vector<8x16xf32>
    %167 = arith.addf %165, %166 : vector<8x16xf32>
    %168 = math.tanh %167 : vector<8x16xf32>
    %169 = arith.truncf %168 : vector<8x16xf32> to vector<8x16xbf16>
    %c10 = arith.constant 10 : index
    %c0_37 = arith.constant 0 : index
    %c0_38 = arith.constant 0 : index
    %170 = vector.load %arg4[%c10, %c0_37, %c0_38] : memref<36x16x128xbf16, #tpu.memory_space<vmem>>, vector<1x16x128xbf16>
    %171 = vector.shape_cast %170 : vector<1x16x128xbf16> to vector<16x128xbf16>
    %cst_39 = arith.constant dense<0.000000e+00> : vector<8x128xf32>
    %172 = tpu.matmul %169, %171, %cst_39 {dimension_numbers = #tpu.dot_dimension_numbers<[1], [0], [0], [1], [0, 0, 1, 1], [], []>} : vector<8x16xbf16>, vector<16x128xbf16>, vector<8x128xf32> -> vector<8x128xf32>
    %173 = arith.addf %158, %172 : vector<8x128xf32>
    %174 = vector.extract_strided_slice %3 {offsets = [104, 0], sizes = [8, 16], strides = [1, 1]} : vector<440x16xf32> to vector<8x16xf32>
    %175 = vector.extract_strided_slice %4 {offsets = [112, 0], sizes = [8, 16], strides = [1, 1]} : vector<440x16xf32> to vector<8x16xf32>
    %176 = arith.addf %174, %175 : vector<8x16xf32>
    %177 = vector.extract_strided_slice %5 {offsets = [168, 0], sizes = [8, 16], strides = [1, 1]} : vector<440x16xf32> to vector<8x16xf32>
    %178 = arith.addf %176, %177 : vector<8x16xf32>
    %179 = vector.extract_strided_slice %6 {offsets = [176, 0], sizes = [8, 16], strides = [1, 1]} : vector<440x16xf32> to vector<8x16xf32>
    %180 = arith.addf %178, %179 : vector<8x16xf32>
    %181 = vector.broadcast %7 : vector<1x16xf32> to vector<8x16xf32>
    %182 = arith.addf %180, %181 : vector<8x16xf32>
    %183 = math.tanh %182 : vector<8x16xf32>
    %184 = arith.truncf %183 : vector<8x16xf32> to vector<8x16xbf16>
    %c11 = arith.constant 11 : index
    %c0_40 = arith.constant 0 : index
    %c0_41 = arith.constant 0 : index
    %185 = vector.load %arg4[%c11, %c0_40, %c0_41] : memref<36x16x128xbf16, #tpu.memory_space<vmem>>, vector<1x16x128xbf16>
    %186 = vector.shape_cast %185 : vector<1x16x128xbf16> to vector<16x128xbf16>
    %cst_42 = arith.constant dense<0.000000e+00> : vector<8x128xf32>
    %187 = tpu.matmul %184, %186, %cst_42 {dimension_numbers = #tpu.dot_dimension_numbers<[1], [0], [0], [1], [0, 0, 1, 1], [], []>} : vector<8x16xbf16>, vector<16x128xbf16>, vector<8x128xf32> -> vector<8x128xf32>
    %188 = arith.addf %173, %187 : vector<8x128xf32>
    %189 = vector.extract_strided_slice %3 {offsets = [128, 0], sizes = [8, 16], strides = [1, 1]} : vector<440x16xf32> to vector<8x16xf32>
    %190 = vector.extract_strided_slice %4 {offsets = [136, 0], sizes = [8, 16], strides = [1, 1]} : vector<440x16xf32> to vector<8x16xf32>
    %191 = arith.addf %189, %190 : vector<8x16xf32>
    %192 = vector.extract_strided_slice %5 {offsets = [192, 0], sizes = [8, 16], strides = [1, 1]} : vector<440x16xf32> to vector<8x16xf32>
    %193 = arith.addf %191, %192 : vector<8x16xf32>
    %194 = vector.extract_strided_slice %6 {offsets = [200, 0], sizes = [8, 16], strides = [1, 1]} : vector<440x16xf32> to vector<8x16xf32>
    %195 = arith.addf %193, %194 : vector<8x16xf32>
    %196 = vector.broadcast %7 : vector<1x16xf32> to vector<8x16xf32>
    %197 = arith.addf %195, %196 : vector<8x16xf32>
    %198 = math.tanh %197 : vector<8x16xf32>
    %199 = arith.truncf %198 : vector<8x16xf32> to vector<8x16xbf16>
    %c12 = arith.constant 12 : index
    %c0_43 = arith.constant 0 : index
    %c0_44 = arith.constant 0 : index
    %200 = vector.load %arg4[%c12, %c0_43, %c0_44] : memref<36x16x128xbf16, #tpu.memory_space<vmem>>, vector<1x16x128xbf16>
    %201 = vector.shape_cast %200 : vector<1x16x128xbf16> to vector<16x128xbf16>
    %cst_45 = arith.constant dense<0.000000e+00> : vector<8x128xf32>
    %202 = tpu.matmul %199, %201, %cst_45 {dimension_numbers = #tpu.dot_dimension_numbers<[1], [0], [0], [1], [0, 0, 1, 1], [], []>} : vector<8x16xbf16>, vector<16x128xbf16>, vector<8x128xf32> -> vector<8x128xf32>
    %203 = arith.addf %188, %202 : vector<8x128xf32>
    %204 = vector.extract_strided_slice %3 {offsets = [136, 0], sizes = [8, 16], strides = [1, 1]} : vector<440x16xf32> to vector<8x16xf32>
    %205 = vector.extract_strided_slice %4 {offsets = [144, 0], sizes = [8, 16], strides = [1, 1]} : vector<440x16xf32> to vector<8x16xf32>
    %206 = arith.addf %204, %205 : vector<8x16xf32>
    %207 = vector.extract_strided_slice %5 {offsets = [200, 0], sizes = [8, 16], strides = [1, 1]} : vector<440x16xf32> to vector<8x16xf32>
    %208 = arith.addf %206, %207 : vector<8x16xf32>
    %209 = vector.extract_strided_slice %6 {offsets = [208, 0], sizes = [8, 16], strides = [1, 1]} : vector<440x16xf32> to vector<8x16xf32>
    %210 = arith.addf %208, %209 : vector<8x16xf32>
    %211 = vector.broadcast %7 : vector<1x16xf32> to vector<8x16xf32>
    %212 = arith.addf %210, %211 : vector<8x16xf32>
    %213 = math.tanh %212 : vector<8x16xf32>
    %214 = arith.truncf %213 : vector<8x16xf32> to vector<8x16xbf16>
    %c13 = arith.constant 13 : index
    %c0_46 = arith.constant 0 : index
    %c0_47 = arith.constant 0 : index
    %215 = vector.load %arg4[%c13, %c0_46, %c0_47] : memref<36x16x128xbf16, #tpu.memory_space<vmem>>, vector<1x16x128xbf16>
    %216 = vector.shape_cast %215 : vector<1x16x128xbf16> to vector<16x128xbf16>
    %cst_48 = arith.constant dense<0.000000e+00> : vector<8x128xf32>
    %217 = tpu.matmul %214, %216, %cst_48 {dimension_numbers = #tpu.dot_dimension_numbers<[1], [0], [0], [1], [0, 0, 1, 1], [], []>} : vector<8x16xbf16>, vector<16x128xbf16>, vector<8x128xf32> -> vector<8x128xf32>
    %218 = arith.addf %203, %217 : vector<8x128xf32>
    %219 = vector.extract_strided_slice %3 {offsets = [144, 0], sizes = [8, 16], strides = [1, 1]} : vector<440x16xf32> to vector<8x16xf32>
    %220 = vector.extract_strided_slice %4 {offsets = [152, 0], sizes = [8, 16], strides = [1, 1]} : vector<440x16xf32> to vector<8x16xf32>
    %221 = arith.addf %219, %220 : vector<8x16xf32>
    %222 = vector.extract_strided_slice %5 {offsets = [208, 0], sizes = [8, 16], strides = [1, 1]} : vector<440x16xf32> to vector<8x16xf32>
    %223 = arith.addf %221, %222 : vector<8x16xf32>
    %224 = vector.extract_strided_slice %6 {offsets = [216, 0], sizes = [8, 16], strides = [1, 1]} : vector<440x16xf32> to vector<8x16xf32>
    %225 = arith.addf %223, %224 : vector<8x16xf32>
    %226 = vector.broadcast %7 : vector<1x16xf32> to vector<8x16xf32>
    %227 = arith.addf %225, %226 : vector<8x16xf32>
    %228 = math.tanh %227 : vector<8x16xf32>
    %229 = arith.truncf %228 : vector<8x16xf32> to vector<8x16xbf16>
    %c14 = arith.constant 14 : index
    %c0_49 = arith.constant 0 : index
    %c0_50 = arith.constant 0 : index
    %230 = vector.load %arg4[%c14, %c0_49, %c0_50] : memref<36x16x128xbf16, #tpu.memory_space<vmem>>, vector<1x16x128xbf16>
    %231 = vector.shape_cast %230 : vector<1x16x128xbf16> to vector<16x128xbf16>
    %cst_51 = arith.constant dense<0.000000e+00> : vector<8x128xf32>
    %232 = tpu.matmul %229, %231, %cst_51 {dimension_numbers = #tpu.dot_dimension_numbers<[1], [0], [0], [1], [0, 0, 1, 1], [], []>} : vector<8x16xbf16>, vector<16x128xbf16>, vector<8x128xf32> -> vector<8x128xf32>
    %233 = arith.addf %218, %232 : vector<8x128xf32>
    %234 = vector.extract_strided_slice %3 {offsets = [152, 0], sizes = [8, 16], strides = [1, 1]} : vector<440x16xf32> to vector<8x16xf32>
    %235 = vector.extract_strided_slice %4 {offsets = [160, 0], sizes = [8, 16], strides = [1, 1]} : vector<440x16xf32> to vector<8x16xf32>
    %236 = arith.addf %234, %235 : vector<8x16xf32>
    %237 = vector.extract_strided_slice %5 {offsets = [216, 0], sizes = [8, 16], strides = [1, 1]} : vector<440x16xf32> to vector<8x16xf32>
    %238 = arith.addf %236, %237 : vector<8x16xf32>
    %239 = vector.extract_strided_slice %6 {offsets = [224, 0], sizes = [8, 16], strides = [1, 1]} : vector<440x16xf32> to vector<8x16xf32>
    %240 = arith.addf %238, %239 : vector<8x16xf32>
    %241 = vector.broadcast %7 : vector<1x16xf32> to vector<8x16xf32>
    %242 = arith.addf %240, %241 : vector<8x16xf32>
    %243 = math.tanh %242 : vector<8x16xf32>
    %244 = arith.truncf %243 : vector<8x16xf32> to vector<8x16xbf16>
    %c15 = arith.constant 15 : index
    %c0_52 = arith.constant 0 : index
    %c0_53 = arith.constant 0 : index
    %245 = vector.load %arg4[%c15, %c0_52, %c0_53] : memref<36x16x128xbf16, #tpu.memory_space<vmem>>, vector<1x16x128xbf16>
    %246 = vector.shape_cast %245 : vector<1x16x128xbf16> to vector<16x128xbf16>
    %cst_54 = arith.constant dense<0.000000e+00> : vector<8x128xf32>
    %247 = tpu.matmul %244, %246, %cst_54 {dimension_numbers = #tpu.dot_dimension_numbers<[1], [0], [0], [1], [0, 0, 1, 1], [], []>} : vector<8x16xbf16>, vector<16x128xbf16>, vector<8x128xf32> -> vector<8x128xf32>
    %248 = arith.addf %233, %247 : vector<8x128xf32>
    %249 = vector.extract_strided_slice %3 {offsets = [160, 0], sizes = [8, 16], strides = [1, 1]} : vector<440x16xf32> to vector<8x16xf32>
    %250 = vector.extract_strided_slice %4 {offsets = [168, 0], sizes = [8, 16], strides = [1, 1]} : vector<440x16xf32> to vector<8x16xf32>
    %251 = arith.addf %249, %250 : vector<8x16xf32>
    %252 = vector.extract_strided_slice %5 {offsets = [224, 0], sizes = [8, 16], strides = [1, 1]} : vector<440x16xf32> to vector<8x16xf32>
    %253 = arith.addf %251, %252 : vector<8x16xf32>
    %254 = vector.extract_strided_slice %6 {offsets = [232, 0], sizes = [8, 16], strides = [1, 1]} : vector<440x16xf32> to vector<8x16xf32>
    %255 = arith.addf %253, %254 : vector<8x16xf32>
    %256 = vector.broadcast %7 : vector<1x16xf32> to vector<8x16xf32>
    %257 = arith.addf %255, %256 : vector<8x16xf32>
    %258 = math.tanh %257 : vector<8x16xf32>
    %259 = arith.truncf %258 : vector<8x16xf32> to vector<8x16xbf16>
    %c16 = arith.constant 16 : index
    %c0_55 = arith.constant 0 : index
    %c0_56 = arith.constant 0 : index
    %260 = vector.load %arg4[%c16, %c0_55, %c0_56] : memref<36x16x128xbf16, #tpu.memory_space<vmem>>, vector<1x16x128xbf16>
    %261 = vector.shape_cast %260 : vector<1x16x128xbf16> to vector<16x128xbf16>
    %cst_57 = arith.constant dense<0.000000e+00> : vector<8x128xf32>
    %262 = tpu.matmul %259, %261, %cst_57 {dimension_numbers = #tpu.dot_dimension_numbers<[1], [0], [0], [1], [0, 0, 1, 1], [], []>} : vector<8x16xbf16>, vector<16x128xbf16>, vector<8x128xf32> -> vector<8x128xf32>
    %263 = arith.addf %248, %262 : vector<8x128xf32>
    %264 = vector.extract_strided_slice %3 {offsets = [168, 0], sizes = [8, 16], strides = [1, 1]} : vector<440x16xf32> to vector<8x16xf32>
    %265 = vector.extract_strided_slice %4 {offsets = [176, 0], sizes = [8, 16], strides = [1, 1]} : vector<440x16xf32> to vector<8x16xf32>
    %266 = arith.addf %264, %265 : vector<8x16xf32>
    %267 = vector.extract_strided_slice %5 {offsets = [232, 0], sizes = [8, 16], strides = [1, 1]} : vector<440x16xf32> to vector<8x16xf32>
    %268 = arith.addf %266, %267 : vector<8x16xf32>
    %269 = vector.extract_strided_slice %6 {offsets = [240, 0], sizes = [8, 16], strides = [1, 1]} : vector<440x16xf32> to vector<8x16xf32>
    %270 = arith.addf %268, %269 : vector<8x16xf32>
    %271 = vector.broadcast %7 : vector<1x16xf32> to vector<8x16xf32>
    %272 = arith.addf %270, %271 : vector<8x16xf32>
    %273 = math.tanh %272 : vector<8x16xf32>
    %274 = arith.truncf %273 : vector<8x16xf32> to vector<8x16xbf16>
    %c17 = arith.constant 17 : index
    %c0_58 = arith.constant 0 : index
    %c0_59 = arith.constant 0 : index
    %275 = vector.load %arg4[%c17, %c0_58, %c0_59] : memref<36x16x128xbf16, #tpu.memory_space<vmem>>, vector<1x16x128xbf16>
    %276 = vector.shape_cast %275 : vector<1x16x128xbf16> to vector<16x128xbf16>
    %cst_60 = arith.constant dense<0.000000e+00> : vector<8x128xf32>
    %277 = tpu.matmul %274, %276, %cst_60 {dimension_numbers = #tpu.dot_dimension_numbers<[1], [0], [0], [1], [0, 0, 1, 1], [], []>} : vector<8x16xbf16>, vector<16x128xbf16>, vector<8x128xf32> -> vector<8x128xf32>
    %278 = arith.addf %263, %277 : vector<8x128xf32>
    %279 = vector.extract_strided_slice %3 {offsets = [192, 0], sizes = [8, 16], strides = [1, 1]} : vector<440x16xf32> to vector<8x16xf32>
    %280 = vector.extract_strided_slice %4 {offsets = [200, 0], sizes = [8, 16], strides = [1, 1]} : vector<440x16xf32> to vector<8x16xf32>
    %281 = arith.addf %279, %280 : vector<8x16xf32>
    %282 = vector.extract_strided_slice %5 {offsets = [256, 0], sizes = [8, 16], strides = [1, 1]} : vector<440x16xf32> to vector<8x16xf32>
    %283 = arith.addf %281, %282 : vector<8x16xf32>
    %284 = vector.extract_strided_slice %6 {offsets = [264, 0], sizes = [8, 16], strides = [1, 1]} : vector<440x16xf32> to vector<8x16xf32>
    %285 = arith.addf %283, %284 : vector<8x16xf32>
    %286 = vector.broadcast %7 : vector<1x16xf32> to vector<8x16xf32>
    %287 = arith.addf %285, %286 : vector<8x16xf32>
    %288 = math.tanh %287 : vector<8x16xf32>
    %289 = arith.truncf %288 : vector<8x16xf32> to vector<8x16xbf16>
    %c18 = arith.constant 18 : index
    %c0_61 = arith.constant 0 : index
    %c0_62 = arith.constant 0 : index
    %290 = vector.load %arg4[%c18, %c0_61, %c0_62] : memref<36x16x128xbf16, #tpu.memory_space<vmem>>, vector<1x16x128xbf16>
    %291 = vector.shape_cast %290 : vector<1x16x128xbf16> to vector<16x128xbf16>
    %cst_63 = arith.constant dense<0.000000e+00> : vector<8x128xf32>
    %292 = tpu.matmul %289, %291, %cst_63 {dimension_numbers = #tpu.dot_dimension_numbers<[1], [0], [0], [1], [0, 0, 1, 1], [], []>} : vector<8x16xbf16>, vector<16x128xbf16>, vector<8x128xf32> -> vector<8x128xf32>
    %293 = arith.addf %278, %292 : vector<8x128xf32>
    %294 = vector.extract_strided_slice %3 {offsets = [200, 0], sizes = [8, 16], strides = [1, 1]} : vector<440x16xf32> to vector<8x16xf32>
    %295 = vector.extract_strided_slice %4 {offsets = [208, 0], sizes = [8, 16], strides = [1, 1]} : vector<440x16xf32> to vector<8x16xf32>
    %296 = arith.addf %294, %295 : vector<8x16xf32>
    %297 = vector.extract_strided_slice %5 {offsets = [264, 0], sizes = [8, 16], strides = [1, 1]} : vector<440x16xf32> to vector<8x16xf32>
    %298 = arith.addf %296, %297 : vector<8x16xf32>
    %299 = vector.extract_strided_slice %6 {offsets = [272, 0], sizes = [8, 16], strides = [1, 1]} : vector<440x16xf32> to vector<8x16xf32>
    %300 = arith.addf %298, %299 : vector<8x16xf32>
    %301 = vector.broadcast %7 : vector<1x16xf32> to vector<8x16xf32>
    %302 = arith.addf %300, %301 : vector<8x16xf32>
    %303 = math.tanh %302 : vector<8x16xf32>
    %304 = arith.truncf %303 : vector<8x16xf32> to vector<8x16xbf16>
    %c19 = arith.constant 19 : index
    %c0_64 = arith.constant 0 : index
    %c0_65 = arith.constant 0 : index
    %305 = vector.load %arg4[%c19, %c0_64, %c0_65] : memref<36x16x128xbf16, #tpu.memory_space<vmem>>, vector<1x16x128xbf16>
    %306 = vector.shape_cast %305 : vector<1x16x128xbf16> to vector<16x128xbf16>
    %cst_66 = arith.constant dense<0.000000e+00> : vector<8x128xf32>
    %307 = tpu.matmul %304, %306, %cst_66 {dimension_numbers = #tpu.dot_dimension_numbers<[1], [0], [0], [1], [0, 0, 1, 1], [], []>} : vector<8x16xbf16>, vector<16x128xbf16>, vector<8x128xf32> -> vector<8x128xf32>
    %308 = arith.addf %293, %307 : vector<8x128xf32>
    %309 = vector.extract_strided_slice %3 {offsets = [208, 0], sizes = [8, 16], strides = [1, 1]} : vector<440x16xf32> to vector<8x16xf32>
    %310 = vector.extract_strided_slice %4 {offsets = [216, 0], sizes = [8, 16], strides = [1, 1]} : vector<440x16xf32> to vector<8x16xf32>
    %311 = arith.addf %309, %310 : vector<8x16xf32>
    %312 = vector.extract_strided_slice %5 {offsets = [272, 0], sizes = [8, 16], strides = [1, 1]} : vector<440x16xf32> to vector<8x16xf32>
    %313 = arith.addf %311, %312 : vector<8x16xf32>
    %314 = vector.extract_strided_slice %6 {offsets = [280, 0], sizes = [8, 16], strides = [1, 1]} : vector<440x16xf32> to vector<8x16xf32>
    %315 = arith.addf %313, %314 : vector<8x16xf32>
    %316 = vector.broadcast %7 : vector<1x16xf32> to vector<8x16xf32>
    %317 = arith.addf %315, %316 : vector<8x16xf32>
    %318 = math.tanh %317 : vector<8x16xf32>
    %319 = arith.truncf %318 : vector<8x16xf32> to vector<8x16xbf16>
    %c20 = arith.constant 20 : index
    %c0_67 = arith.constant 0 : index
    %c0_68 = arith.constant 0 : index
    %320 = vector.load %arg4[%c20, %c0_67, %c0_68] : memref<36x16x128xbf16, #tpu.memory_space<vmem>>, vector<1x16x128xbf16>
    %321 = vector.shape_cast %320 : vector<1x16x128xbf16> to vector<16x128xbf16>
    %cst_69 = arith.constant dense<0.000000e+00> : vector<8x128xf32>
    %322 = tpu.matmul %319, %321, %cst_69 {dimension_numbers = #tpu.dot_dimension_numbers<[1], [0], [0], [1], [0, 0, 1, 1], [], []>} : vector<8x16xbf16>, vector<16x128xbf16>, vector<8x128xf32> -> vector<8x128xf32>
    %323 = arith.addf %308, %322 : vector<8x128xf32>
    %324 = vector.extract_strided_slice %3 {offsets = [216, 0], sizes = [8, 16], strides = [1, 1]} : vector<440x16xf32> to vector<8x16xf32>
    %325 = vector.extract_strided_slice %4 {offsets = [224, 0], sizes = [8, 16], strides = [1, 1]} : vector<440x16xf32> to vector<8x16xf32>
    %326 = arith.addf %324, %325 : vector<8x16xf32>
    %327 = vector.extract_strided_slice %5 {offsets = [280, 0], sizes = [8, 16], strides = [1, 1]} : vector<440x16xf32> to vector<8x16xf32>
    %328 = arith.addf %326, %327 : vector<8x16xf32>
    %329 = vector.extract_strided_slice %6 {offsets = [288, 0], sizes = [8, 16], strides = [1, 1]} : vector<440x16xf32> to vector<8x16xf32>
    %330 = arith.addf %328, %329 : vector<8x16xf32>
    %331 = vector.broadcast %7 : vector<1x16xf32> to vector<8x16xf32>
    %332 = arith.addf %330, %331 : vector<8x16xf32>
    %333 = math.tanh %332 : vector<8x16xf32>
    %334 = arith.truncf %333 : vector<8x16xf32> to vector<8x16xbf16>
    %c21 = arith.constant 21 : index
    %c0_70 = arith.constant 0 : index
    %c0_71 = arith.constant 0 : index
    %335 = vector.load %arg4[%c21, %c0_70, %c0_71] : memref<36x16x128xbf16, #tpu.memory_space<vmem>>, vector<1x16x128xbf16>
    %336 = vector.shape_cast %335 : vector<1x16x128xbf16> to vector<16x128xbf16>
    %cst_72 = arith.constant dense<0.000000e+00> : vector<8x128xf32>
    %337 = tpu.matmul %334, %336, %cst_72 {dimension_numbers = #tpu.dot_dimension_numbers<[1], [0], [0], [1], [0, 0, 1, 1], [], []>} : vector<8x16xbf16>, vector<16x128xbf16>, vector<8x128xf32> -> vector<8x128xf32>
    %338 = arith.addf %323, %337 : vector<8x128xf32>
    %339 = vector.extract_strided_slice %3 {offsets = [224, 0], sizes = [8, 16], strides = [1, 1]} : vector<440x16xf32> to vector<8x16xf32>
    %340 = vector.extract_strided_slice %4 {offsets = [232, 0], sizes = [8, 16], strides = [1, 1]} : vector<440x16xf32> to vector<8x16xf32>
    %341 = arith.addf %339, %340 : vector<8x16xf32>
    %342 = vector.extract_strided_slice %5 {offsets = [288, 0], sizes = [8, 16], strides = [1, 1]} : vector<440x16xf32> to vector<8x16xf32>
    %343 = arith.addf %341, %342 : vector<8x16xf32>
    %344 = vector.extract_strided_slice %6 {offsets = [296, 0], sizes = [8, 16], strides = [1, 1]} : vector<440x16xf32> to vector<8x16xf32>
    %345 = arith.addf %343, %344 : vector<8x16xf32>
    %346 = vector.broadcast %7 : vector<1x16xf32> to vector<8x16xf32>
    %347 = arith.addf %345, %346 : vector<8x16xf32>
    %348 = math.tanh %347 : vector<8x16xf32>
    %349 = arith.truncf %348 : vector<8x16xf32> to vector<8x16xbf16>
    %c22 = arith.constant 22 : index
    %c0_73 = arith.constant 0 : index
    %c0_74 = arith.constant 0 : index
    %350 = vector.load %arg4[%c22, %c0_73, %c0_74] : memref<36x16x128xbf16, #tpu.memory_space<vmem>>, vector<1x16x128xbf16>
    %351 = vector.shape_cast %350 : vector<1x16x128xbf16> to vector<16x128xbf16>
    %cst_75 = arith.constant dense<0.000000e+00> : vector<8x128xf32>
    %352 = tpu.matmul %349, %351, %cst_75 {dimension_numbers = #tpu.dot_dimension_numbers<[1], [0], [0], [1], [0, 0, 1, 1], [], []>} : vector<8x16xbf16>, vector<16x128xbf16>, vector<8x128xf32> -> vector<8x128xf32>
    %353 = arith.addf %338, %352 : vector<8x128xf32>
    %354 = vector.extract_strided_slice %3 {offsets = [232, 0], sizes = [8, 16], strides = [1, 1]} : vector<440x16xf32> to vector<8x16xf32>
    %355 = vector.extract_strided_slice %4 {offsets = [240, 0], sizes = [8, 16], strides = [1, 1]} : vector<440x16xf32> to vector<8x16xf32>
    %356 = arith.addf %354, %355 : vector<8x16xf32>
    %357 = vector.extract_strided_slice %5 {offsets = [296, 0], sizes = [8, 16], strides = [1, 1]} : vector<440x16xf32> to vector<8x16xf32>
    %358 = arith.addf %356, %357 : vector<8x16xf32>
    %359 = vector.extract_strided_slice %6 {offsets = [304, 0], sizes = [8, 16], strides = [1, 1]} : vector<440x16xf32> to vector<8x16xf32>
    %360 = arith.addf %358, %359 : vector<8x16xf32>
    %361 = vector.broadcast %7 : vector<1x16xf32> to vector<8x16xf32>
    %362 = arith.addf %360, %361 : vector<8x16xf32>
    %363 = math.tanh %362 : vector<8x16xf32>
    %364 = arith.truncf %363 : vector<8x16xf32> to vector<8x16xbf16>
    %c23 = arith.constant 23 : index
    %c0_76 = arith.constant 0 : index
    %c0_77 = arith.constant 0 : index
    %365 = vector.load %arg4[%c23, %c0_76, %c0_77] : memref<36x16x128xbf16, #tpu.memory_space<vmem>>, vector<1x16x128xbf16>
    %366 = vector.shape_cast %365 : vector<1x16x128xbf16> to vector<16x128xbf16>
    %cst_78 = arith.constant dense<0.000000e+00> : vector<8x128xf32>
    %367 = tpu.matmul %364, %366, %cst_78 {dimension_numbers = #tpu.dot_dimension_numbers<[1], [0], [0], [1], [0, 0, 1, 1], [], []>} : vector<8x16xbf16>, vector<16x128xbf16>, vector<8x128xf32> -> vector<8x128xf32>
    %368 = arith.addf %353, %367 : vector<8x128xf32>
    %369 = vector.extract_strided_slice %3 {offsets = [256, 0], sizes = [8, 16], strides = [1, 1]} : vector<440x16xf32> to vector<8x16xf32>
    %370 = vector.extract_strided_slice %4 {offsets = [264, 0], sizes = [8, 16], strides = [1, 1]} : vector<440x16xf32> to vector<8x16xf32>
    %371 = arith.addf %369, %370 : vector<8x16xf32>
    %372 = vector.extract_strided_slice %5 {offsets = [320, 0], sizes = [8, 16], strides = [1, 1]} : vector<440x16xf32> to vector<8x16xf32>
    %373 = arith.addf %371, %372 : vector<8x16xf32>
    %374 = vector.extract_strided_slice %6 {offsets = [328, 0], sizes = [8, 16], strides = [1, 1]} : vector<440x16xf32> to vector<8x16xf32>
    %375 = arith.addf %373, %374 : vector<8x16xf32>
    %376 = vector.broadcast %7 : vector<1x16xf32> to vector<8x16xf32>
    %377 = arith.addf %375, %376 : vector<8x16xf32>
    %378 = math.tanh %377 : vector<8x16xf32>
    %379 = arith.truncf %378 : vector<8x16xf32> to vector<8x16xbf16>
    %c24 = arith.constant 24 : index
    %c0_79 = arith.constant 0 : index
    %c0_80 = arith.constant 0 : index
    %380 = vector.load %arg4[%c24, %c0_79, %c0_80] : memref<36x16x128xbf16, #tpu.memory_space<vmem>>, vector<1x16x128xbf16>
    %381 = vector.shape_cast %380 : vector<1x16x128xbf16> to vector<16x128xbf16>
    %cst_81 = arith.constant dense<0.000000e+00> : vector<8x128xf32>
    %382 = tpu.matmul %379, %381, %cst_81 {dimension_numbers = #tpu.dot_dimension_numbers<[1], [0], [0], [1], [0, 0, 1, 1], [], []>} : vector<8x16xbf16>, vector<16x128xbf16>, vector<8x128xf32> -> vector<8x128xf32>
    %383 = arith.addf %368, %382 : vector<8x128xf32>
    %384 = vector.extract_strided_slice %3 {offsets = [264, 0], sizes = [8, 16], strides = [1, 1]} : vector<440x16xf32> to vector<8x16xf32>
    %385 = vector.extract_strided_slice %4 {offsets = [272, 0], sizes = [8, 16], strides = [1, 1]} : vector<440x16xf32> to vector<8x16xf32>
    %386 = arith.addf %384, %385 : vector<8x16xf32>
    %387 = vector.extract_strided_slice %5 {offsets = [328, 0], sizes = [8, 16], strides = [1, 1]} : vector<440x16xf32> to vector<8x16xf32>
    %388 = arith.addf %386, %387 : vector<8x16xf32>
    %389 = vector.extract_strided_slice %6 {offsets = [336, 0], sizes = [8, 16], strides = [1, 1]} : vector<440x16xf32> to vector<8x16xf32>
    %390 = arith.addf %388, %389 : vector<8x16xf32>
    %391 = vector.broadcast %7 : vector<1x16xf32> to vector<8x16xf32>
    %392 = arith.addf %390, %391 : vector<8x16xf32>
    %393 = math.tanh %392 : vector<8x16xf32>
    %394 = arith.truncf %393 : vector<8x16xf32> to vector<8x16xbf16>
    %c25 = arith.constant 25 : index
    %c0_82 = arith.constant 0 : index
    %c0_83 = arith.constant 0 : index
    %395 = vector.load %arg4[%c25, %c0_82, %c0_83] : memref<36x16x128xbf16, #tpu.memory_space<vmem>>, vector<1x16x128xbf16>
    %396 = vector.shape_cast %395 : vector<1x16x128xbf16> to vector<16x128xbf16>
    %cst_84 = arith.constant dense<0.000000e+00> : vector<8x128xf32>
    %397 = tpu.matmul %394, %396, %cst_84 {dimension_numbers = #tpu.dot_dimension_numbers<[1], [0], [0], [1], [0, 0, 1, 1], [], []>} : vector<8x16xbf16>, vector<16x128xbf16>, vector<8x128xf32> -> vector<8x128xf32>
    %398 = arith.addf %383, %397 : vector<8x128xf32>
    %399 = vector.extract_strided_slice %3 {offsets = [272, 0], sizes = [8, 16], strides = [1, 1]} : vector<440x16xf32> to vector<8x16xf32>
    %400 = vector.extract_strided_slice %4 {offsets = [280, 0], sizes = [8, 16], strides = [1, 1]} : vector<440x16xf32> to vector<8x16xf32>
    %401 = arith.addf %399, %400 : vector<8x16xf32>
    %402 = vector.extract_strided_slice %5 {offsets = [336, 0], sizes = [8, 16], strides = [1, 1]} : vector<440x16xf32> to vector<8x16xf32>
    %403 = arith.addf %401, %402 : vector<8x16xf32>
    %404 = vector.extract_strided_slice %6 {offsets = [344, 0], sizes = [8, 16], strides = [1, 1]} : vector<440x16xf32> to vector<8x16xf32>
    %405 = arith.addf %403, %404 : vector<8x16xf32>
    %406 = vector.broadcast %7 : vector<1x16xf32> to vector<8x16xf32>
    %407 = arith.addf %405, %406 : vector<8x16xf32>
    %408 = math.tanh %407 : vector<8x16xf32>
    %409 = arith.truncf %408 : vector<8x16xf32> to vector<8x16xbf16>
    %c26 = arith.constant 26 : index
    %c0_85 = arith.constant 0 : index
    %c0_86 = arith.constant 0 : index
    %410 = vector.load %arg4[%c26, %c0_85, %c0_86] : memref<36x16x128xbf16, #tpu.memory_space<vmem>>, vector<1x16x128xbf16>
    %411 = vector.shape_cast %410 : vector<1x16x128xbf16> to vector<16x128xbf16>
    %cst_87 = arith.constant dense<0.000000e+00> : vector<8x128xf32>
    %412 = tpu.matmul %409, %411, %cst_87 {dimension_numbers = #tpu.dot_dimension_numbers<[1], [0], [0], [1], [0, 0, 1, 1], [], []>} : vector<8x16xbf16>, vector<16x128xbf16>, vector<8x128xf32> -> vector<8x128xf32>
    %413 = arith.addf %398, %412 : vector<8x128xf32>
    %414 = vector.extract_strided_slice %3 {offsets = [280, 0], sizes = [8, 16], strides = [1, 1]} : vector<440x16xf32> to vector<8x16xf32>
    %415 = vector.extract_strided_slice %4 {offsets = [288, 0], sizes = [8, 16], strides = [1, 1]} : vector<440x16xf32> to vector<8x16xf32>
    %416 = arith.addf %414, %415 : vector<8x16xf32>
    %417 = vector.extract_strided_slice %5 {offsets = [344, 0], sizes = [8, 16], strides = [1, 1]} : vector<440x16xf32> to vector<8x16xf32>
    %418 = arith.addf %416, %417 : vector<8x16xf32>
    %419 = vector.extract_strided_slice %6 {offsets = [352, 0], sizes = [8, 16], strides = [1, 1]} : vector<440x16xf32> to vector<8x16xf32>
    %420 = arith.addf %418, %419 : vector<8x16xf32>
    %421 = vector.broadcast %7 : vector<1x16xf32> to vector<8x16xf32>
    %422 = arith.addf %420, %421 : vector<8x16xf32>
    %423 = math.tanh %422 : vector<8x16xf32>
    %424 = arith.truncf %423 : vector<8x16xf32> to vector<8x16xbf16>
    %c27 = arith.constant 27 : index
    %c0_88 = arith.constant 0 : index
    %c0_89 = arith.constant 0 : index
    %425 = vector.load %arg4[%c27, %c0_88, %c0_89] : memref<36x16x128xbf16, #tpu.memory_space<vmem>>, vector<1x16x128xbf16>
    %426 = vector.shape_cast %425 : vector<1x16x128xbf16> to vector<16x128xbf16>
    %cst_90 = arith.constant dense<0.000000e+00> : vector<8x128xf32>
    %427 = tpu.matmul %424, %426, %cst_90 {dimension_numbers = #tpu.dot_dimension_numbers<[1], [0], [0], [1], [0, 0, 1, 1], [], []>} : vector<8x16xbf16>, vector<16x128xbf16>, vector<8x128xf32> -> vector<8x128xf32>
    %428 = arith.addf %413, %427 : vector<8x128xf32>
    %429 = vector.extract_strided_slice %3 {offsets = [288, 0], sizes = [8, 16], strides = [1, 1]} : vector<440x16xf32> to vector<8x16xf32>
    %430 = vector.extract_strided_slice %4 {offsets = [296, 0], sizes = [8, 16], strides = [1, 1]} : vector<440x16xf32> to vector<8x16xf32>
    %431 = arith.addf %429, %430 : vector<8x16xf32>
    %432 = vector.extract_strided_slice %5 {offsets = [352, 0], sizes = [8, 16], strides = [1, 1]} : vector<440x16xf32> to vector<8x16xf32>
    %433 = arith.addf %431, %432 : vector<8x16xf32>
    %434 = vector.extract_strided_slice %6 {offsets = [360, 0], sizes = [8, 16], strides = [1, 1]} : vector<440x16xf32> to vector<8x16xf32>
    %435 = arith.addf %433, %434 : vector<8x16xf32>
    %436 = vector.broadcast %7 : vector<1x16xf32> to vector<8x16xf32>
    %437 = arith.addf %435, %436 : vector<8x16xf32>
    %438 = math.tanh %437 : vector<8x16xf32>
    %439 = arith.truncf %438 : vector<8x16xf32> to vector<8x16xbf16>
    %c28 = arith.constant 28 : index
    %c0_91 = arith.constant 0 : index
    %c0_92 = arith.constant 0 : index
    %440 = vector.load %arg4[%c28, %c0_91, %c0_92] : memref<36x16x128xbf16, #tpu.memory_space<vmem>>, vector<1x16x128xbf16>
    %441 = vector.shape_cast %440 : vector<1x16x128xbf16> to vector<16x128xbf16>
    %cst_93 = arith.constant dense<0.000000e+00> : vector<8x128xf32>
    %442 = tpu.matmul %439, %441, %cst_93 {dimension_numbers = #tpu.dot_dimension_numbers<[1], [0], [0], [1], [0, 0, 1, 1], [], []>} : vector<8x16xbf16>, vector<16x128xbf16>, vector<8x128xf32> -> vector<8x128xf32>
    %443 = arith.addf %428, %442 : vector<8x128xf32>
    %444 = vector.extract_strided_slice %3 {offsets = [296, 0], sizes = [8, 16], strides = [1, 1]} : vector<440x16xf32> to vector<8x16xf32>
    %445 = vector.extract_strided_slice %4 {offsets = [304, 0], sizes = [8, 16], strides = [1, 1]} : vector<440x16xf32> to vector<8x16xf32>
    %446 = arith.addf %444, %445 : vector<8x16xf32>
    %447 = vector.extract_strided_slice %5 {offsets = [360, 0], sizes = [8, 16], strides = [1, 1]} : vector<440x16xf32> to vector<8x16xf32>
    %448 = arith.addf %446, %447 : vector<8x16xf32>
    %449 = vector.extract_strided_slice %6 {offsets = [368, 0], sizes = [8, 16], strides = [1, 1]} : vector<440x16xf32> to vector<8x16xf32>
    %450 = arith.addf %448, %449 : vector<8x16xf32>
    %451 = vector.broadcast %7 : vector<1x16xf32> to vector<8x16xf32>
    %452 = arith.addf %450, %451 : vector<8x16xf32>
    %453 = math.tanh %452 : vector<8x16xf32>
    %454 = arith.truncf %453 : vector<8x16xf32> to vector<8x16xbf16>
    %c29 = arith.constant 29 : index
    %c0_94 = arith.constant 0 : index
    %c0_95 = arith.constant 0 : index
    %455 = vector.load %arg4[%c29, %c0_94, %c0_95] : memref<36x16x128xbf16, #tpu.memory_space<vmem>>, vector<1x16x128xbf16>
    %456 = vector.shape_cast %455 : vector<1x16x128xbf16> to vector<16x128xbf16>
    %cst_96 = arith.constant dense<0.000000e+00> : vector<8x128xf32>
    %457 = tpu.matmul %454, %456, %cst_96 {dimension_numbers = #tpu.dot_dimension_numbers<[1], [0], [0], [1], [0, 0, 1, 1], [], []>} : vector<8x16xbf16>, vector<16x128xbf16>, vector<8x128xf32> -> vector<8x128xf32>
    %458 = arith.addf %443, %457 : vector<8x128xf32>
    %459 = vector.extract_strided_slice %3 {offsets = [320, 0], sizes = [8, 16], strides = [1, 1]} : vector<440x16xf32> to vector<8x16xf32>
    %460 = vector.extract_strided_slice %4 {offsets = [328, 0], sizes = [8, 16], strides = [1, 1]} : vector<440x16xf32> to vector<8x16xf32>
    %461 = arith.addf %459, %460 : vector<8x16xf32>
    %462 = vector.extract_strided_slice %5 {offsets = [384, 0], sizes = [8, 16], strides = [1, 1]} : vector<440x16xf32> to vector<8x16xf32>
    %463 = arith.addf %461, %462 : vector<8x16xf32>
    %464 = vector.extract_strided_slice %6 {offsets = [392, 0], sizes = [8, 16], strides = [1, 1]} : vector<440x16xf32> to vector<8x16xf32>
    %465 = arith.addf %463, %464 : vector<8x16xf32>
    %466 = vector.broadcast %7 : vector<1x16xf32> to vector<8x16xf32>
    %467 = arith.addf %465, %466 : vector<8x16xf32>
    %468 = math.tanh %467 : vector<8x16xf32>
    %469 = arith.truncf %468 : vector<8x16xf32> to vector<8x16xbf16>
    %c30 = arith.constant 30 : index
    %c0_97 = arith.constant 0 : index
    %c0_98 = arith.constant 0 : index
    %470 = vector.load %arg4[%c30, %c0_97, %c0_98] : memref<36x16x128xbf16, #tpu.memory_space<vmem>>, vector<1x16x128xbf16>
    %471 = vector.shape_cast %470 : vector<1x16x128xbf16> to vector<16x128xbf16>
    %cst_99 = arith.constant dense<0.000000e+00> : vector<8x128xf32>
    %472 = tpu.matmul %469, %471, %cst_99 {dimension_numbers = #tpu.dot_dimension_numbers<[1], [0], [0], [1], [0, 0, 1, 1], [], []>} : vector<8x16xbf16>, vector<16x128xbf16>, vector<8x128xf32> -> vector<8x128xf32>
    %473 = arith.addf %458, %472 : vector<8x128xf32>
    %474 = vector.extract_strided_slice %3 {offsets = [328, 0], sizes = [8, 16], strides = [1, 1]} : vector<440x16xf32> to vector<8x16xf32>
    %475 = vector.extract_strided_slice %4 {offsets = [336, 0], sizes = [8, 16], strides = [1, 1]} : vector<440x16xf32> to vector<8x16xf32>
    %476 = arith.addf %474, %475 : vector<8x16xf32>
    %477 = vector.extract_strided_slice %5 {offsets = [392, 0], sizes = [8, 16], strides = [1, 1]} : vector<440x16xf32> to vector<8x16xf32>
    %478 = arith.addf %476, %477 : vector<8x16xf32>
    %479 = vector.extract_strided_slice %6 {offsets = [400, 0], sizes = [8, 16], strides = [1, 1]} : vector<440x16xf32> to vector<8x16xf32>
    %480 = arith.addf %478, %479 : vector<8x16xf32>
    %481 = vector.broadcast %7 : vector<1x16xf32> to vector<8x16xf32>
    %482 = arith.addf %480, %481 : vector<8x16xf32>
    %483 = math.tanh %482 : vector<8x16xf32>
    %484 = arith.truncf %483 : vector<8x16xf32> to vector<8x16xbf16>
    %c31 = arith.constant 31 : index
    %c0_100 = arith.constant 0 : index
    %c0_101 = arith.constant 0 : index
    %485 = vector.load %arg4[%c31, %c0_100, %c0_101] : memref<36x16x128xbf16, #tpu.memory_space<vmem>>, vector<1x16x128xbf16>
    %486 = vector.shape_cast %485 : vector<1x16x128xbf16> to vector<16x128xbf16>
    %cst_102 = arith.constant dense<0.000000e+00> : vector<8x128xf32>
    %487 = tpu.matmul %484, %486, %cst_102 {dimension_numbers = #tpu.dot_dimension_numbers<[1], [0], [0], [1], [0, 0, 1, 1], [], []>} : vector<8x16xbf16>, vector<16x128xbf16>, vector<8x128xf32> -> vector<8x128xf32>
    %488 = arith.addf %473, %487 : vector<8x128xf32>
    %489 = vector.extract_strided_slice %3 {offsets = [336, 0], sizes = [8, 16], strides = [1, 1]} : vector<440x16xf32> to vector<8x16xf32>
    %490 = vector.extract_strided_slice %4 {offsets = [344, 0], sizes = [8, 16], strides = [1, 1]} : vector<440x16xf32> to vector<8x16xf32>
    %491 = arith.addf %489, %490 : vector<8x16xf32>
    %492 = vector.extract_strided_slice %5 {offsets = [400, 0], sizes = [8, 16], strides = [1, 1]} : vector<440x16xf32> to vector<8x16xf32>
    %493 = arith.addf %491, %492 : vector<8x16xf32>
    %494 = vector.extract_strided_slice %6 {offsets = [408, 0], sizes = [8, 16], strides = [1, 1]} : vector<440x16xf32> to vector<8x16xf32>
    %495 = arith.addf %493, %494 : vector<8x16xf32>
    %496 = vector.broadcast %7 : vector<1x16xf32> to vector<8x16xf32>
    %497 = arith.addf %495, %496 : vector<8x16xf32>
    %498 = math.tanh %497 : vector<8x16xf32>
    %499 = arith.truncf %498 : vector<8x16xf32> to vector<8x16xbf16>
    %c32 = arith.constant 32 : index
    %c0_103 = arith.constant 0 : index
    %c0_104 = arith.constant 0 : index
    %500 = vector.load %arg4[%c32, %c0_103, %c0_104] : memref<36x16x128xbf16, #tpu.memory_space<vmem>>, vector<1x16x128xbf16>
    %501 = vector.shape_cast %500 : vector<1x16x128xbf16> to vector<16x128xbf16>
    %cst_105 = arith.constant dense<0.000000e+00> : vector<8x128xf32>
    %502 = tpu.matmul %499, %501, %cst_105 {dimension_numbers = #tpu.dot_dimension_numbers<[1], [0], [0], [1], [0, 0, 1, 1], [], []>} : vector<8x16xbf16>, vector<16x128xbf16>, vector<8x128xf32> -> vector<8x128xf32>
    %503 = arith.addf %488, %502 : vector<8x128xf32>
    %504 = vector.extract_strided_slice %3 {offsets = [344, 0], sizes = [8, 16], strides = [1, 1]} : vector<440x16xf32> to vector<8x16xf32>
    %505 = vector.extract_strided_slice %4 {offsets = [352, 0], sizes = [8, 16], strides = [1, 1]} : vector<440x16xf32> to vector<8x16xf32>
    %506 = arith.addf %504, %505 : vector<8x16xf32>
    %507 = vector.extract_strided_slice %5 {offsets = [408, 0], sizes = [8, 16], strides = [1, 1]} : vector<440x16xf32> to vector<8x16xf32>
    %508 = arith.addf %506, %507 : vector<8x16xf32>
    %509 = vector.extract_strided_slice %6 {offsets = [416, 0], sizes = [8, 16], strides = [1, 1]} : vector<440x16xf32> to vector<8x16xf32>
    %510 = arith.addf %508, %509 : vector<8x16xf32>
    %511 = vector.broadcast %7 : vector<1x16xf32> to vector<8x16xf32>
    %512 = arith.addf %510, %511 : vector<8x16xf32>
    %513 = math.tanh %512 : vector<8x16xf32>
    %514 = arith.truncf %513 : vector<8x16xf32> to vector<8x16xbf16>
    %c33 = arith.constant 33 : index
    %c0_106 = arith.constant 0 : index
    %c0_107 = arith.constant 0 : index
    %515 = vector.load %arg4[%c33, %c0_106, %c0_107] : memref<36x16x128xbf16, #tpu.memory_space<vmem>>, vector<1x16x128xbf16>
    %516 = vector.shape_cast %515 : vector<1x16x128xbf16> to vector<16x128xbf16>
    %cst_108 = arith.constant dense<0.000000e+00> : vector<8x128xf32>
    %517 = tpu.matmul %514, %516, %cst_108 {dimension_numbers = #tpu.dot_dimension_numbers<[1], [0], [0], [1], [0, 0, 1, 1], [], []>} : vector<8x16xbf16>, vector<16x128xbf16>, vector<8x128xf32> -> vector<8x128xf32>
    %518 = arith.addf %503, %517 : vector<8x128xf32>
    %519 = vector.extract_strided_slice %3 {offsets = [352, 0], sizes = [8, 16], strides = [1, 1]} : vector<440x16xf32> to vector<8x16xf32>
    %520 = vector.extract_strided_slice %4 {offsets = [360, 0], sizes = [8, 16], strides = [1, 1]} : vector<440x16xf32> to vector<8x16xf32>
    %521 = arith.addf %519, %520 : vector<8x16xf32>
    %522 = vector.extract_strided_slice %5 {offsets = [416, 0], sizes = [8, 16], strides = [1, 1]} : vector<440x16xf32> to vector<8x16xf32>
    %523 = arith.addf %521, %522 : vector<8x16xf32>
    %524 = vector.extract_strided_slice %6 {offsets = [424, 0], sizes = [8, 16], strides = [1, 1]} : vector<440x16xf32> to vector<8x16xf32>
    %525 = arith.addf %523, %524 : vector<8x16xf32>
    %526 = vector.broadcast %7 : vector<1x16xf32> to vector<8x16xf32>
    %527 = arith.addf %525, %526 : vector<8x16xf32>
    %528 = math.tanh %527 : vector<8x16xf32>
    %529 = arith.truncf %528 : vector<8x16xf32> to vector<8x16xbf16>
    %c34 = arith.constant 34 : index
    %c0_109 = arith.constant 0 : index
    %c0_110 = arith.constant 0 : index
    %530 = vector.load %arg4[%c34, %c0_109, %c0_110] : memref<36x16x128xbf16, #tpu.memory_space<vmem>>, vector<1x16x128xbf16>
    %531 = vector.shape_cast %530 : vector<1x16x128xbf16> to vector<16x128xbf16>
    %cst_111 = arith.constant dense<0.000000e+00> : vector<8x128xf32>
    %532 = tpu.matmul %529, %531, %cst_111 {dimension_numbers = #tpu.dot_dimension_numbers<[1], [0], [0], [1], [0, 0, 1, 1], [], []>} : vector<8x16xbf16>, vector<16x128xbf16>, vector<8x128xf32> -> vector<8x128xf32>
    %533 = arith.addf %518, %532 : vector<8x128xf32>
    %534 = vector.extract_strided_slice %3 {offsets = [360, 0], sizes = [8, 16], strides = [1, 1]} : vector<440x16xf32> to vector<8x16xf32>
    %535 = vector.extract_strided_slice %4 {offsets = [368, 0], sizes = [8, 16], strides = [1, 1]} : vector<440x16xf32> to vector<8x16xf32>
    %536 = arith.addf %534, %535 : vector<8x16xf32>
    %537 = vector.extract_strided_slice %5 {offsets = [424, 0], sizes = [8, 16], strides = [1, 1]} : vector<440x16xf32> to vector<8x16xf32>
    %538 = arith.addf %536, %537 : vector<8x16xf32>
    %539 = vector.extract_strided_slice %6 {offsets = [432, 0], sizes = [8, 16], strides = [1, 1]} : vector<440x16xf32> to vector<8x16xf32>
    %540 = arith.addf %538, %539 : vector<8x16xf32>
    %541 = vector.broadcast %7 : vector<1x16xf32> to vector<8x16xf32>
    %542 = arith.addf %540, %541 : vector<8x16xf32>
    %543 = math.tanh %542 : vector<8x16xf32>
    %544 = arith.truncf %543 : vector<8x16xf32> to vector<8x16xbf16>
    %c35 = arith.constant 35 : index
    %c0_112 = arith.constant 0 : index
    %c0_113 = arith.constant 0 : index
    %545 = vector.load %arg4[%c35, %c0_112, %c0_113] : memref<36x16x128xbf16, #tpu.memory_space<vmem>>, vector<1x16x128xbf16>
    %546 = vector.shape_cast %545 : vector<1x16x128xbf16> to vector<16x128xbf16>
    %cst_114 = arith.constant dense<0.000000e+00> : vector<8x128xf32>
    %547 = tpu.matmul %544, %546, %cst_114 {dimension_numbers = #tpu.dot_dimension_numbers<[1], [0], [0], [1], [0, 0, 1, 1], [], []>} : vector<8x16xbf16>, vector<16x128xbf16>, vector<8x128xf32> -> vector<8x128xf32>
    %548 = arith.addf %533, %547 : vector<8x128xf32>
    %c0_115 = arith.constant 0 : index
    %c0_116 = arith.constant 0 : index
    %549 = vector.load %arg5[%c0_115, %c0_116] : memref<1x128xf32, #tpu.memory_space<vmem>>, vector<1x128xf32>
    %550 = vector.broadcast %549 : vector<1x128xf32> to vector<8x128xf32>
    %551 = arith.addf %548, %550 : vector<8x128xf32>
    %552 = math.tanh %551 : vector<8x128xf32>
    %c0_117 = arith.constant 0 : index
    %c0_118 = arith.constant 0 : index
    %553 = vector.load %arg6[%c0_117, %c0_118] : memref<8x128xf32, #tpu.memory_space<vmem>>, vector<8x128xf32>
    tpu.vector_store %arg6[%c0_117, %c0_118], %552 {strides = array<i32>} : memref<8x128xf32, #tpu.memory_space<vmem>>, vector<8x128xf32>,
    return
  }
  func.func @transform_0(%arg0: i32) -> (i32, i32) {
    %c0_i32 = arith.constant 0 : i32
    %c0_i32_0 = arith.constant 0 : i32
    return %arg0, %c0_i32 : i32, i32
  }
  func.func @transform_1(%arg0: i32) -> (i32, i32) {
    %c0_i32 = arith.constant 0 : i32
    %c0_i32_0 = arith.constant 0 : i32
    %c0_i32_1 = arith.constant 0 : i32
    return %c0_i32, %c0_i32_0 : i32, i32
  }
  func.func @transform_2(%arg0: i32) -> (i32, i32) {
    %c0_i32 = arith.constant 0 : i32
    %c0_i32_0 = arith.constant 0 : i32
    %c0_i32_1 = arith.constant 0 : i32
    return %c0_i32, %c0_i32_0 : i32, i32
  }
  func.func @transform_3(%arg0: i32) -> (i32, i32, i32) {
    %c0_i32 = arith.constant 0 : i32
    %c0_i32_0 = arith.constant 0 : i32
    %c0_i32_1 = arith.constant 0 : i32
    %c0_i32_2 = arith.constant 0 : i32
    return %c0_i32, %c0_i32_0, %c0_i32_1 : i32, i32, i32
  }
  func.func @transform_4(%arg0: i32) -> (i32, i32) {
    %c0_i32 = arith.constant 0 : i32
    %c0_i32_0 = arith.constant 0 : i32
    %c0_i32_1 = arith.constant 0 : i32
    return %c0_i32, %c0_i32_0 : i32, i32
  }
  func.func @transform_5(%arg0: i32) -> (i32, i32) {
    %c0_i32 = arith.constant 0 : i32
    %c0_i32_0 = arith.constant 0 : i32
    return %arg0, %c0_i32 : i32, i32
  }
}

</mosaic_0001>

<bundles_post_ra>
// kernel: base_cnn_forward.1
= control target key start
LH: loop header
LB: loop body
LE: loop exit
PB: predicated region body
PF: predicated region fallthrough
CT: control target
= control target key end

     0   :  { %10 = vsyncpa [#allocation3], 0  ;;  %s3793_s0 = inlined_call_operand.vmem [shape: bf16[1024,64], index: 0, kind: input, shape index: {}]   ;;  %s3794_s1 = inlined_call_operand.vmem [shape: bf16[64,64], index: 1, kind: input, shape index: {}]   ;;  %s3795_s2 = inlined_call_operand.vmem [shape: f32[1,16], index: 2, kind: input, shape index: {}]   ;;  %s3796_s3 = inlined_call_operand.vmem [shape: bf16[36,16,128], index: 3, kind: input, shape index: {}]   ;;  %s3797_s4 = inlined_call_operand.vmem [shape: f32[1,128], index: 4, kind: input, shape index: {}]   ;;  %s3798_s5 = inlined_call_operand.hbm [shape: f32[16,128], index: 5, kind: output, shape index: {}]  }
   0x1   :  { %12 = vsyncpa [#allocation3 + $0x1], 0  ;;  %s2994_s18 = smov 0   ;;  %s2996_s19 = smov 0  }
   0x2   :  { %s2998_s20 = smov 0   ;;  %s3000_s21 = smov 0  }
   0x3 LB: > { %s3015_s22 = sadd.s32 4294967295, %s2959_s21   ;;  %s2286_s23 = sadd.s32 4294967294, %s2959_s21   ;;  %s2959_s21 = sphi %s3000_s21, %s3807_s21   ;;  %s2955_s20 = sphi %s2998_s20, %s3806_s20   ;;  %s2951_s19 = sphi %s2996_s19, %s3805_s19   ;;  %s2947_s18 = sphi %s2994_s18, %s3804_s18  }
   0x4   : > { %s3019_s24 = sadd.s32 1, %s2959_s21   ;;  %s135_s25 = sadd.s32 1, %s2955_s20 }
   0x5   : > { %s132_s26 = ssub.s32 %s2959_s21, %s3019_s24  ;;  %p145_p0 = scmp.ne.s32.totalorder %s2955_s20, %s2951_s19 }
   0x6   : > { %p133_p1 = scmp.eq.s32.totalorder %s132_s26, 0  ;;  %p146_p2 = scmp.eq.s32.totalorder %s3015_s22, 1 }
   0x7   : > { %p151_p3 = scmp.ne.s32.totalorder %s2951_s19, %s2947_s18  ;;  %p152_p4 = scmp.eq.s32.totalorder %s2286_s23, 1 }
   0x8   : > { %s3030_s27 = scalar_select %p133_p1, %s2955_s20, %s135_s25  }
   0x9   : > { %p3032_p5 = por %p146_p2, %p145_p0  ;;  %p3036_p6 = por %p152_p4, %p151_p3 }
   0xa   : > { %p2289_p7 = scmp.ge.s32.totalorder %s2959_s21, 1  ;;  %p191_p8 = scmp.lt.s32.totalorder %s2959_s21, 3 }
   0xc   : > { %p192_p9 = pnand %p2289_p7, %p191_p8 }
   0xe   : > { %195 = sbr.rel (%p192_p9) target bundleno = 773 (0x305), region = 40 }
  0x13   : > { %v2729_v0 = vld [vmem:[%s3794_s1 + $0x18] sm:$0xff]  ;;  %s2291_s7 = sshll.u32 %s3015_s22, 6  ;;  %v2728_v1 = vld [vmem:[%s3794_s1 + $0x10] sm:$0xff]  ;;  %v2727_v2 = vld [vmem:[%s3794_s1 + $0x8] sm:$0xff]  ;;  %vm451_vm0 = vcmask 523264   ;;  %s2961_s23 = smov 96  }
  0x14   : > { %p220_p10 = scmp.lt.s32.totalorder %s2291_s7, 127  ;;  %540 = vmatpush.bf16.msra.mxu0 %v2729_v0  ;;  %2766 = vmatpush.bf16.msra.mxu1 %v2729_v0  ;;  %v2726_v3 = vld [vmem:[%s3794_s1] sm:$0xff]  ;;  %s2962_s25 = smov 80   ;;  %vm728_vm1 = vcmask 130048  }
  0x15   : > { %2767 = vmatpush.bf16.msra.mxu2 %v2729_v0  ;;  %2768 = vmatpush.bf16.msra.mxu3 %v2729_v0  ;;  %s2963_s26 = smov 112   ;;  %s2696_s11 = sshll.u32 %s3015_s22, 3 }
  0x16   : > { %s3809_s7 = smov (!%p220_p10, %s2291_s7), 127  ;;  %s2222_s14 = scalar_lea.hbm %s3798_s5, %s2696_s11 }
  0x17   : > { %s2292_s12 = sshll.u32 %s3809_s7, 2  ;;  %s2226_s16 = sshll.u32 %s2222_s14, 4  ;;  %s2227_s16 = int_to_ptr.hbm [resolvable:$true] %s2226_s16 }
  0x18   : > { %541 = vmatpush.bf16.msra.mxu0 %v2728_v1  ;;  %2769 = vmatpush.bf16.msra.mxu1 %v2728_v1  ;;  %s3058_s17 = scalar_lea.vmem %s3793_s0, %s2292_s12  ;;  %s2917_s7 = scalar_lea.hbm %s3798_s5, 16 }
  0x19   : > { %2770 = vmatpush.bf16.msra.mxu2 %v2728_v1  ;;  %2771 = vmatpush.bf16.msra.mxu3 %v2728_v1  ;;  %v2699_v4 = vld [vmem:[%s3058_s17] sm:$0xff]  ;;  %v2700_v6 = vld [vmem:[%s3058_s17 + $0x8] sm:$0xff]  ;;  %v2701_v8 = vld [vmem:[%s3058_s17 + $0x10] sm:$0xff] }
  0x1a   : > { %v2715_v5 = vld [vmem:[%s3058_s17 + $0x80] sm:$0xff]  ;;  %v2716_v7 = vld [vmem:[%s3058_s17 + $0x88] sm:$0xff]  ;;  %v2717_v9 = vld [vmem:[%s3058_s17 + $0x90] sm:$0xff] }
  0x1b   : > { %v2702_v10 = vld [vmem:[%s3058_s17 + $0x18] sm:$0xff]  ;;  %v2703_v12 = vld [vmem:[%s3058_s17 + $0x20] sm:$0xff]  ;;  %v2704_v13 = vld [vmem:[%s3058_s17 + $0x28] sm:$0xff] }
  0x1c   : > { %542 = vmatpush.bf16.msra.mxu0 %v2727_v2  ;;  %2772 = vmatpush.bf16.msra.mxu1 %v2727_v2  ;;  %v2718_v11 = vld [vmem:[%s3058_s17 + $0x98] sm:$0xff]  ;;  %v2705_v14 = vld [vmem:[%s3058_s17 + $0x30] sm:$0xff]  ;;  %v2707_v16 = vld [vmem:[%s3058_s17 + $0x40] sm:$0xff] }
  0x1d   : > { %2773 = vmatpush.bf16.msra.mxu2 %v2727_v2  ;;  %2774 = vmatpush.bf16.msra.mxu3 %v2727_v2  ;;  %v2706_v15 = vld [vmem:[%s3058_s17 + $0x38] sm:$0xff]  ;;  %v2708_v21 = vld [vmem:[%s3058_s17 + $0x48] sm:$0xff]  ;;  %v2709_v26 = vld [vmem:[%s3058_s17 + $0x50] sm:$0xff] }
  0x1e   : > { %v2710_v31 = vld [vmem:[%s3058_s17 + $0x58] sm:$0xff]  ;;  %v2711_v36 = vld [vmem:[%s3058_s17 + $0x60] sm:$0xff]  ;;  %v2712_v40 = vld [vmem:[%s3058_s17 + $0x68] sm:$0xff] }
  0x1f   : > { %v2719_v38 = vld [vmem:[%s3058_s17 + $0xa0] sm:$0xff]  ;;  %v2720_v42 = vld [vmem:[%s3058_s17 + $0xa8] sm:$0xff]  ;;  %v2713_v44 = vld [vmem:[%s3058_s17 + $0x70] sm:$0xff] }
  0x20   : > { %543 = vmatpush.bf16.msra.mxu0 %v2726_v3  ;;  %2775 = vmatpush.bf16.msra.mxu1 %v2726_v3  ;;  %v2721_v46 = vld [vmem:[%s3058_s17 + $0xb0] sm:$0xff]  ;;  %v2714_v48 = vld [vmem:[%s3058_s17 + $0x78] sm:$0xff]  ;;  %v2723_v51 = vld [vmem:[%s3058_s17 + $0xc0] sm:$0xff] }
  0x21   : > { %2776 = vmatpush.bf16.msra.mxu2 %v2726_v3  ;;  %2777 = vmatpush.bf16.msra.mxu3 %v2726_v3  ;;  %v2722_v50 = vld [vmem:[%s3058_s17 + $0xb8] sm:$0xff]  ;;  %v2724_v58 = vld [vmem:[%s3058_s17 + $0xc8] sm:$0xff] }
  0x23   : > { %2417 = vmatmul.msk.bf16.vlgmr.msra.gmra.mxu0 %vm451_vm0, %v2699_v4  ;;  %2433 = vmatmul.msk.bf16.vlgmr.msra.gmra.mxu1 %vm451_vm0, %v2715_v5  ;;  %v2725_v4 = vld [vmem:[%s3058_s17 + $0xd0] sm:$0xff] }
  0x24   : > { %2437 = vmatmul.msk.bf16.vlgmr.msra.gmra.mxu2 %vm451_vm0, %v2719_v38  ;;  %2441 = vmatmul.msk.bf16.vlgmr.msra.gmra.mxu3 %vm451_vm0, %v2723_v51  ;;  %v2732_v38 = vld [vmem:[%s3796_s3 + $0x10] sm:$0xff] }
  0x25   : > { %803 = vmatpush.bf16.msrb.mxu3 %v2732_v38 }
  0x33   : > { %2418 = vmatmul.msk.bf16.gmra.mxu0 %vm451_vm0, %v2700_v6  ;;  %2434 = vmatmul.msk.bf16.gmra.mxu1 %vm451_vm0, %v2716_v7 }
  0x34   : > { %2438 = vmatmul.msk.bf16.gmra.mxu2 %vm451_vm0, %v2720_v42  ;;  %2442 = vmatmul.msk.bf16.gmra.mxu3 %vm451_vm0, %v2724_v58 }
  0x43   : > { %2419 = vmatmul.msk.bf16.gmra.mxu0 %vm451_vm0, %v2701_v8  ;;  %2435 = vmatmul.msk.bf16.gmra.mxu1 %vm451_vm0, %v2717_v9 }
  0x44   : > { %2439 = vmatmul.msk.bf16.gmra.mxu2 %vm451_vm0, %v2721_v46  ;;  %2443 = vmatmul.msk.bf16.gmra.mxu3 %vm451_vm0, %v2725_v4 }
  0x53   : > { %2420 = vmatmul.msk.bf16.gmra.mxu0 %vm451_vm0, %v2702_v10  ;;  %2436 = vmatmul.msk.bf16.gmra.mxu1 %vm451_vm0, %v2718_v11  ;;  %v280_v11 = vld [vmem:[%s3058_s17 + $0xd8] sm:$0xf] }
  0x54   : > { %2440 = vmatmul.msk.bf16.gmra.mxu2 %vm451_vm0, %v2722_v50 }
  0x63   : > { %2421 = vmatmul.msk.bf16.gmra.mxu0 %vm451_vm0, %v2703_v12  ;;  %v398_v12 = vunpack.c.l.b16 %v280_v11 }
  0x73   : > { %2422 = vmatmul.msk.bf16.gmra.mxu0 %vm451_vm0, %v2704_v13  ;;  %v426_v13 = vpack.c.b16 %v398_v12, %v398_v12 }
  0x75   : > { %2444 = vmatmul.msk.bf16.gmra.mxu3 %vm451_vm0, %v426_v13 }
  0x83   : > { %2423 = vmatmul.msk.bf16.gmra.mxu0 %vm451_vm0, %v2705_v14  ;;  %v2730_v14 = vld [vmem:[%s3796_s3] sm:$0xff] }
  0x84   : > { %761 = vmatpush.bf16.msrb.mxu2 %v2730_v14  ;;  %v2734_v14 = vld [vmem:[%s3796_s3 + $0x20] sm:$0xff] }
  0x88   : > { %889 = vmatpush.bf16.msra.mxu2 %v2734_v14 }
  0x93   : > { %2424 = vmatmul.msk.bf16.gmra.mxu0 %vm451_vm0, %v2706_v15 }
  0xa0   : > { %v3085_v17 = vpop.f32.mrf.mxu0  ;;  %v3087_v18 = vpop.f32.mrf.mxu1 }
  0xa1   : > { %1450 = vrot.lane.b32.xlu0 %v3087_v18, %s2961_s23 }
  0xa3   : > { %2425 = vmatmul.msk.bf16.gmra.mxu0 %vm451_vm0, %v2707_v16  ;;  %v2731_v16 = vld [vmem:[%s3796_s3 + $0x8] sm:$0xff] }
  0xa4   : > { %739 = vmatpush.bf16.msrb.mxu1 %v2731_v16 }
  0xa8   : > { %v3092_v19 = vpop.f32.mrf.mxu0  ;;  %v3094_v20 = vpop.f32.mrf.mxu1 }
  0xa9   : > { %1455 = vrot.lane.b32.xlu2 %v3094_v20, %s2962_s25  ;;  %1492 = vrot.lane.b32.xlu1 %v3094_v20, %s2961_s23 }
  0xaa   : > { %680 = vrot.lane.b32.xlu0 %v3092_v19, %s2963_s26 }
  0xb0   : > { %v3103_v22 = vpop.f32.mrf.mxu0  ;;  %v3105_v23 = vpop.f32.mrf.mxu1 }
  0xb1   : > { %1497 = vrot.lane.b32.xlu1 %v3105_v23, %s2962_s25  ;;  %703 = vrot.lane.b32.xlu2 %v3103_v22, %s2963_s26 }
  0xb2   : > { %1741 = vrot.lane.b32.xlu0 %v3105_v23, %s2963_s26 }
  0xb3   : > { %2426 = vmatmul.msk.bf16.gmra.mxu0 %vm451_vm0, %v2708_v21 }
  0xb8   : > { %v3114_v24 = vpop.f32.mrf.mxu0  ;;  %v3116_v25 = vpop.f32.mrf.mxu1 }
  0xb9   : > { %1534 = vrot.lane.b32.xlu2 %v3105_v23, %s2961_s23  ;;  %768 = vrot.lane.b32.xlu1 %v3114_v24, %s2963_s26 }
  0xba   : > { %1576 = vrot.lane.b32.xlu0 %v3116_v25, %s2961_s23 }
  0xc0   : > { %v3125_v27 = vpop.f32.mrf.mxu0  ;;  %v3127_v28 = vpop.f32.mrf.mxu1 }
  0xc1   : > { %1581 = vrot.lane.b32.xlu2 %v3127_v28, %s2962_s25  ;;  %1539 = vrot.lane.b32.xlu1 %v3116_v25, %s2962_s25 }
  0xc2   : > { %811 = vrot.lane.b32.xlu0 %v3125_v27, %s2963_s26 }
  0xc3   : > { %2427 = vmatmul.msk.bf16.gmra.mxu0 %vm451_vm0, %v2709_v26 }
  0xc8   : > { %v3136_v29 = vpop.f32.mrf.mxu0  ;;  %v3138_v30 = vpop.f32.mrf.mxu1 }
  0xc9   : > { %3802 = vst [vmem:[#allocation5_spill] sm:$0xff] %v3138_v30  ;;  %1660 = vrot.lane.b32.xlu2 %v3138_v30, %s2961_s23  ;;  %1618 = vrot.lane.b32.xlu1 %v3127_v28, %s2961_s23 }
  0xca   : > { %854 = vrot.lane.b32.xlu0 %v3136_v29, %s2963_s26 }
  0xd0   : > { %v560_v32 = vpop.f32.mrf.mxu0  ;;  %v3147_v33 = vpop.f32.mrf.mxu1 }
  0xd1   : > { %897 = vrot.lane.b32.xlu2 %v560_v32, %s2963_s26  ;;  %1623 = vrot.lane.b32.xlu1 %v3138_v30, %s2962_s25 }
  0xd3   : > { %2428 = vmatmul.msk.bf16.gmra.mxu0 %vm451_vm0, %v2710_v31 }
  0xd8   : > { %v562_v34 = vpop.f32.mrf.mxu0  ;;  %v638_v35 = vpop.f32.mrf.mxu1 }
  0xd9   : > { %1665 = vrot.lane.b32.xlu1 %v3147_v33, %s2962_s25 }
  0xe0   : > { %v3156_v37 = vpop.f32.mrf.mxu0 }
  0xe1   : > { %685 = vrot.lane.b32.xlu0 %v3156_v37, %s2961_s23 }
  0xe3   : > { %2429 = vmatmul.msk.bf16.gmra.mxu0 %vm451_vm0, %v2711_v36 }
  0xe8   : > { %v3163_v39 = vpop.f32.mrf.mxu0 }
  0xe9   : > { %707 = vrot.lane.b32.xlu0 %v3163_v39, %s2961_s23  ;;  %690 = vrot.lane.b32.xlu1 %v3163_v39, %s2962_s25 }
  0xf0   : > { %v3170_v41 = vpop.f32.mrf.mxu0 }
  0xf1   : > { %939 = vrot.lane.b32.xlu0 %v3163_v39, %s2963_s26  ;;  %772 = vrot.lane.b32.xlu2 %v3170_v41, %s2961_s23 }
  0xf3   : > { %2430 = vmatmul.msk.bf16.gmra.mxu0 %vm451_vm0, %v2712_v40 }
  0xf8   : > { %v3179_v43 = vpop.f32.mrf.mxu0 }
  0xf9   : > { %982 = vrot.lane.b32.xlu0 %v3170_v41, %s2963_s26  ;;  %712 = vrot.lane.b32.xlu2 %v3170_v41, %s2962_s25 }
  0xfa   : > { %777 = vrot.lane.b32.xlu1 %v3179_v43, %s2962_s25 }
 0x100   : > { %v3188_v45 = vpop.f32.mrf.mxu0 }
 0x101   : > { %1024 = vrot.lane.b32.xlu2 %v3179_v43, %s2963_s26  ;;  %815 = vrot.lane.b32.xlu0 %v3179_v43, %s2961_s23 }
 0x102   : > { %858 = vrot.lane.b32.xlu1 %v3188_v45, %s2961_s23 }
 0x103   : > { %2431 = vmatmul.msk.bf16.gmra.mxu0 %vm451_vm0, %v2713_v44  ;;  %v3216_v52 = vpop.permute.xlu2 %1455 }
 0x108   : > { %v3199_v47 = vpop.f32.mrf.mxu0 }
 0x109   : > { %1066 = vrot.lane.b32.xlu0 %v3188_v45, %s2963_s26  ;;  %820 = vrot.lane.b32.xlu2 %v3188_v45, %s2962_s25 }
 0x10a   : > { %863 = vrot.lane.b32.xlu1 %v3199_v47, %s2962_s25 }
 0x10b   : > { %v704_v56 = vpop.permute.xlu2 %703 }
 0x10c   : > { %v706_v44 = vadd.f32 %v704_v56, %v3092_v19  ;;  %v2733_v19 = vld [vmem:[%s3796_s3 + $0x18] sm:$0xff] }
 0x10d   : > { %846 = vmatpush.bf16.msra.mxu1 %v2733_v19 }
 0x110   : > { %v579_v49 = vpop.f32.mrf.mxu0 }
 0x111   : > { %1108 = vrot.lane.b32.xlu0 %v3199_v47, %s2963_s26  ;;  %901 = vrot.lane.b32.xlu2 %v3199_v47, %s2961_s23 }
 0x112   : > { %906 = vrot.lane.b32.xlu1 %v579_v49, %s2962_s25 }
 0x113   : > { %2432 = vmatmul.msk.bf16.gmra.mxu0 %vm451_vm0, %v2714_v48  ;;  %v3220_v54 = vpop.permute.xlu0 %1450  ;;  %v3239_v62 = vpop.permute.xlu2 %1534 }
 0x118   : > { %v581_v53 = vpop.f32.mrf.mxu0 }
 0x119   : > { %1150 = vrot.lane.b32.xlu2 %v579_v49, %s2963_s26  ;;  %v3319_v49 = vld [vmem:[%s3795_s2] ss:$0 sm:$0xff] }
 0x11b   : > { %v3223_v55 = vpop.permute.xlu1 %1492  ;;  %v3257_v3 = vpop.permute.xlu2 %1581 }
 0x11c   : > { %v681_v59 = vpop.permute.xlu0 %680 }
 0x11d   : > { %v683_v40 = vadd.f32 %v681_v59, %v3085_v17 }
 0x120   : > { %v3225_v57 = vpop.f32.mrf.mxu0 }
 0x121   : > { %944 = vrot.lane.b32.xlu0 %v3225_v57, %s2961_s23 }
 0x123   : > { %v3230_v60 = vpop.permute.xlu1 %1497  ;;  %v3273_v8 = vpop.permute.xlu2 %1660 }
 0x124   : > { %v3245_v0 = vpop.permute.xlu0 %1741 }
 0x128   : > { %v3233_v61 = vpop.f32.mrf.mxu0 }
 0x129   : > { %1192 = vrot.lane.b32.xlu0 %v3233_v61, %s2963_s26  ;;  %949 = vrot.lane.b32.xlu2 %v3233_v61, %s2962_s25 }
 0x12a   : > { %986 = vrot.lane.b32.xlu1 %v3233_v61, %s2961_s23 }
 0x12b   : > { %v3243_v63 = vpop.permute.xlu1 %768  ;;  %v3295_v21 = vpop.permute.xlu2 %897 }
 0x12c   : > { %v3261_v5 = vpop.permute.xlu0 %1576  ;;  %v771_v38 = vadd.f32 %v3243_v63, %v3103_v22 }
 0x130   : > { %v3247_v1 = vpop.f32.mrf.mxu0 }
 0x131   : > { %1235 = vrot.lane.b32.xlu0 %v3247_v1, %s2963_s26  ;;  %1028 = vrot.lane.b32.xlu2 %v3247_v1, %s2961_s23 }
 0x132   : > { %991 = vrot.lane.b32.xlu1 %v3247_v1, %s2962_s25 }
 0x133   : > { %v3255_v2 = vpop.permute.xlu1 %1539 }
 0x134   : > { %v3277_v10 = vpop.permute.xlu0 %811 }
 0x138   : > { %v3263_v6 = vpop.f32.mrf.mxu0 }
 0x139   : > { %1277 = vrot.lane.b32.xlu2 %v3263_v6, %s2963_s26  ;;  %1070 = vrot.lane.b32.xlu0 %v3263_v6, %s2961_s23 }
 0x13a   : > { %1033 = vrot.lane.b32.xlu1 %v3263_v6, %s2962_s25 }
 0x13b   : > { %v3271_v7 = vpop.permute.xlu1 %1618 }
 0x13c   : > { %v3305_v31 = vpop.permute.xlu0 %854 }
 0x140   : > { %v3275_v9 = vpop.f32.mrf.mxu0 }
 0x141   : > { %1319 = vrot.lane.b32.xlu0 %v3275_v9, %s2963_s26  ;;  %1075 = vrot.lane.b32.xlu2 %v3275_v9, %s2962_s25 }
 0x142   : > { %1112 = vrot.lane.b32.xlu1 %v3275_v9, %s2961_s23 }
 0x143   : > { %v3290_v15 = vpop.permute.xlu1 %1623 }
 0x148   : > { %v3297_v26 = vpop.f32.mrf.mxu0 }
 0x149   : > { %1361 = vrot.lane.b32.xlu0 %v3297_v26, %s2963_s26  ;;  %1154 = vrot.lane.b32.xlu2 %v3297_v26, %s2961_s23 }
 0x14a   : > { %1117 = vrot.lane.b32.xlu1 %v3297_v26, %s2962_s25 }
 0x14b   : > { %v773_v32 = vpop.permute.xlu2 %772  ;;  %v3308_v35 = vpop.permute.xlu1 %1665 }
 0x150   : > { %v598_v34 = vpop.f32.mrf.mxu0 }
 0x151   : > { %1403 = vrot.lane.b32.xlu2 %v598_v34, %s2963_s26 }
 0x152   : > { %1159 = vrot.lane.b32.xlu1 %v598_v34, %s2962_s25 }
 0x153   : > { %v686_v36 = vpop.permute.xlu0 %685  ;;  %v713_v48 = vpop.permute.xlu2 %712 }
 0x154   : > { %v688_v46 = vadd.f32 %v686_v36, %v683_v40 }
 0x158   : > { %v600_v42 = vpop.f32.mrf.mxu0 }
 0x159   : > { %v3348_v42 = vpop.f32.mrf.mxu2 }
 0x15b   : > { %v708_v50 = vpop.permute.xlu0 %707  ;;  %v691_v51 = vpop.permute.xlu1 %690 }
 0x15c   : > { %v710_v53 = vadd.f32 %v708_v50, %v706_v44  ;;  %v693_v58 = vadd.f32 %v691_v51, %v688_v46  ;;  %v3332_v59 = vpop.permute.xlu2 %1024  ;;  %v775_v44 = vadd.f32 %v773_v32, %v771_v38  ;;  %v2735_v50 = vld [vmem:[%s3796_s3 + $0x28] sm:$0xff]  ;;  %v814_v32 = vadd.f32 %v3277_v10, %v3114_v24 }
 0x15d   : > { %932 = vmatpush.bf16.msra.mxu3 %v2735_v50  ;;  %v857_v24 = vadd.f32 %v3305_v31, %v3125_v27  ;;  %v900_v50 = vadd.f32 %v3295_v21, %v3136_v29 }
 0x15e   : > { %v715_v4 = vadd.f32 %v713_v48, %v710_v53  ;;  %v697_v11 = vadd.f32 %v3319_v49, %v693_v58 }
 0x160   : > { %v716_v12 = vadd.f32 %v3319_v49, %v715_v4  ;;  %2822 = vtanh.f32 %v697_v11  ;;  %v3323_v17 = vpop.f32.mrf.mxu0 }
 0x161   : > { %1197 = vrot.lane.b32.xlu0 %v3323_v17, %s2961_s23  ;;  %v3367_v58 = vpop.f32.mrf.mxu2 }
 0x162   : > { %2824 = vtanh.f32 %v716_v12 }
 0x163   : > { %v3330_v56 = vpop.permute.xlu0 %939 }
 0x164   : > { %v821_v48 = vpop.permute.xlu2 %820 }
 0x166   : > { %v2823_v13 = vpop.eup %2822 }
 0x167   : > { %v699_v16 = vpack.c.bf16 %v2823_v13, %v2823_v13 }
 0x168   : > { %v2825_v34 = vpop.eup %2824  ;;  %v3337_v36 = vpop.f32.mrf.mxu0 }
 0x169   : > { %v718_v40 = vpack.c.bf16 %v2825_v34, %v2825_v34  ;;  %2456 = vmatmul.msk.bf16.vlgmr.msrb.gmra.mxu2 %vm728_vm1, %v699_v16  ;;  %1445 = vrot.lane.b32.xlu0 %v3337_v36, %s2963_s26  ;;  %v3379_v10 = vpop.f32.mrf.mxu2 }
 0x16a   : > { %1202 = vrot.lane.b32.xlu2 %v3337_v36, %s2962_s25  ;;  %1239 = vrot.lane.b32.xlu1 %v3337_v36, %s2961_s23 }
 0x16b   : > { %v3350_v46 = vpop.permute.xlu0 %982  ;;  %2451 = vmatmul.msk.bf16.vlgmr.msrb.gmra.mxu1 %vm728_vm1, %v718_v40 }
 0x16c   : > { %v778_v22 = vpop.permute.xlu1 %777  ;;  %v902_v16 = vpop.permute.xlu2 %901 }
 0x16d   : > { %v780_v63 = vadd.f32 %v778_v22, %v775_v44 }
 0x16f   : > { %v781_v51 = vadd.f32 %v3319_v49, %v780_v63 }
 0x170   : > { %v3357_v53 = vpop.f32.mrf.mxu0 }
 0x171   : > { %2826 = vtanh.f32 %v781_v51  ;;  %1488 = vrot.lane.b32.xlu0 %v3357_v53, %s2963_s26 }
 0x172   : > { %1281 = vrot.lane.b32.xlu2 %v3357_v53, %s2961_s23  ;;  %1244 = vrot.lane.b32.xlu1 %v3357_v53, %s2962_s25 }
 0x173   : > { %v816_v4 = vpop.permute.xlu0 %815 }
 0x174   : > { %v818_v11 = vadd.f32 %v816_v4, %v814_v32  ;;  %v859_v12 = vpop.permute.xlu1 %858  ;;  %v3395_v4 = vpop.permute.xlu2 %1150 }
 0x175   : > { %v861_v40 = vadd.f32 %v859_v12, %v857_v24  ;;  %v904_v12 = vadd.f32 %v902_v16, %v900_v50 }
 0x176   : > { %v823_v19 = vadd.f32 %v821_v48, %v818_v11  ;;  %v2736_v48 = vld [vmem:[%s3796_s3 + $0x30] sm:$0xff]  ;;  %v3399_v11 = vpop.f32.mrf.mxu2 }
 0x177   : > { %v2827_v13 = vpop.eup %2826  ;;  %975 = vmatpush.bf16.msrb.mxu1 %v2736_v48  ;;  %v942_v48 = vadd.f32 %v3330_v56, %v3156_v37  ;;  %v2739_v56 = vld [vmem:[%s3796_s3 + $0x48] sm:$0xff] }
 0x178   : > { %v783_v14 = vpack.c.bf16 %v2827_v13, %v2827_v13  ;;  %v824_v34 = vadd.f32 %v3319_v49, %v823_v19  ;;  %v3370_v38 = vpop.f32.mrf.mxu0 }
 0x179   : > { %1323 = vrot.lane.b32.xlu0 %v3370_v38, %s2961_s23 }
 0x17a   : > { %2828 = vtanh.f32 %v824_v34  ;;  %2463 = vmatmul.msk.bf16.vlgmr.msrb.gmra.mxu3 %vm728_vm1, %v783_v14  ;;  %1530 = vrot.lane.b32.xlu2 %v3370_v38, %s2963_s26 }
 0x17b   : > { %1286 = vrot.lane.b32.xlu1 %v3370_v38, %s2962_s25  ;;  %v3391_v32 = vpop.permute.xlu0 %1066 }
 0x17c   : > { %v864_v44 = vpop.permute.xlu1 %863 }
 0x17d   : > { %v866_v22 = vadd.f32 %v864_v44, %v861_v40  ;;  %v2737_v44 = vld [vmem:[%s3796_s3 + $0x38] sm:$0xff] }
 0x17e   : > { %v3412_v16 = vpop.f32.mrf.mxu2  ;;  %1017 = vmatpush.bf16.msrb.mxu2 %v2737_v44 }
 0x17f   : > { %v867_v63 = vadd.f32 %v3319_v49, %v866_v22 }
 0x180   : > { %v2829_v27 = vpop.eup %2828  ;;  %v3384_v31 = vpop.f32.mrf.mxu0 }
 0x181   : > { %v826_v51 = vpack.c.bf16 %v2829_v27, %v2829_v27  ;;  %2830 = vtanh.f32 %v867_v63  ;;  %1572 = vrot.lane.b32.xlu0 %v3384_v31, %s2963_s26 }
 0x182   : > { %1328 = vrot.lane.b32.xlu2 %v3384_v31, %s2962_s25 }
 0x183   : > { %1365 = vrot.lane.b32.xlu1 %v3384_v31, %s2961_s23  ;;  %2470 = vmatmul.msk.bf16.vlgmr.msra.gmra.mxu1 %vm728_vm1, %v826_v51  ;;  %v950_v24 = vpop.permute.xlu2 %949  ;;  %v3414_v40 = vpop.permute.xlu0 %1108 }
 0x184   : > { %v907_v29 = vpop.permute.xlu1 %906  ;;  %1101 = vmatpush.bf16.msra.mxu1 %v2739_v56 }
 0x185   : > { %v909_v21 = vadd.f32 %v907_v29, %v904_v12 }
 0x186   : > { %v3428_v50 = vpop.f32.mrf.mxu2 }
 0x187   : > { %v2831_v19 = vpop.eup %2830  ;;  %v910_v13 = vadd.f32 %v3319_v49, %v909_v21 }
 0x188   : > { %v869_v14 = vpack.c.bf16 %v2831_v19, %v2831_v19  ;;  %v3405_v34 = vpop.f32.mrf.mxu0  ;;  %v2738_v19 = vld [vmem:[%s3796_s3 + $0x40] sm:$0xff] }
 0x189   : > { %2832 = vtanh.f32 %v910_v13  ;;  %1614 = vrot.lane.b32.xlu0 %v3405_v34, %s2963_s26  ;;  %1059 = vmatpush.bf16.msrb.mxu3 %v2738_v19 }
 0x18a   : > { %2477 = vmatmul.msk.bf16.vlgmr.msra.gmra.mxu2 %vm728_vm1, %v869_v14  ;;  %1407 = vrot.lane.b32.xlu2 %v3405_v34, %s2961_s23  ;;  %v3440_v14 = vpop.f32.mrf.mxu3 }
 0x18b   : > { %1370 = vrot.lane.b32.xlu1 %v3405_v34, %s2962_s25  ;;  %v1029_v12 = vpop.permute.xlu2 %1028 }
 0x18f   : > { %v2833_v22 = vpop.eup %2832 }
 0x190   : > { %v912_v63 = vpack.c.bf16 %v2833_v22, %v2833_v22  ;;  %v617_v27 = vpop.f32.mrf.mxu0 }
 0x191   : > { %1698 = vrot.lane.b32.xlu0 %v3094_v20, %s2963_s26 }
 0x192   : > { %2484 = vmatmul.msk.bf16.vlgmr.msra.gmra.mxu3 %vm728_vm1, %v912_v63  ;;  %1783 = vrot.lane.b32.xlu2 %v3116_v25, %s2963_s26  ;;  %v3458_v19 = vpop.f32.mrf.mxu3 }
 0x193   : > { %1412 = vrot.lane.b32.xlu1 %v617_v27, %s2962_s25  ;;  %v945_v51 = vpop.permute.xlu0 %944  ;;  %v3450_v63 = vpop.permute.xlu2 %1277 }
 0x194   : > { %v947_v29 = vadd.f32 %v945_v51, %v942_v48  ;;  %v985_v51 = vadd.f32 %v3350_v46, %v3163_v39  ;;  %v2740_v46 = vld [vmem:[%s3796_s3 + $0x50] sm:$0xff] }
 0x195   : > { %1143 = vmatpush.bf16.msra.mxu2 %v2740_v46 }
 0x196   : > { %v952_v21 = vadd.f32 %v950_v24, %v947_v29  ;;  %v3444_v24 = vpop.f32.mrf.mxu2 }
 0x198   : > { %v953_v13 = vadd.f32 %v3319_v49, %v952_v21  ;;  %v619_v37 = vpop.f32.mrf.mxu0 }
 0x199   : > { %1703 = vrot.lane.b32.xlu0 %v3348_v42, %s2961_s23 }
 0x19a   : > { %2834 = vtanh.f32 %v953_v13  ;;  %1787 = vrot.lane.b32.xlu2 %v3379_v10, %s2961_s23 }
 0x19b   : > { %1745 = vrot.lane.b32.xlu1 %v3367_v58, %s2961_s23  ;;  %v3448_v44 = vpop.permute.xlu0 %1192 }
 0x19c   : > { %v987_v22 = vpop.permute.xlu1 %986 }
 0x19d   : > { %v989_v13 = vadd.f32 %v987_v22, %v985_v51  ;;  %v1027_v22 = vadd.f32 %v3332_v59, %v3170_v41  ;;  %v1069_v51 = vadd.f32 %v3391_v32, %v3179_v43  ;;  %v2741_v59 = vld [vmem:[%s3796_s3 + $0x58] sm:$0xff] }
 0x19e   : > { %v657_v21 = vpop.f32.mrf.mxu2  ;;  %1185 = vmatpush.bf16.msra.mxu3 %v2741_v59 }
 0x19f   : > { %v1031_v21 = vadd.f32 %v1029_v12, %v1027_v22 }
 0x1a0   : > { %v2835_v48 = vpop.eup %2834 }
 0x1a1   : > { %v955_v29 = vpack.c.bf16 %v2835_v48, %v2835_v48  ;;  %1867 = vrot.lane.b32.xlu0 %v3138_v30, %s2963_s26  ;;  %v1076_v30 = vpop.permute.xlu2 %1075 }
 0x1a2   : > { %1708 = vrot.lane.b32.xlu2 %v3367_v58, %s2962_s25 }
 0x1a3   : > { %1750 = vrot.lane.b32.xlu1 %v3379_v10, %s2962_s25  ;;  %2491 = vmatmul.msk.bf16.vlgmr.msrb.gmra.mxu1 %vm728_vm1, %v955_v29  ;;  %v3463_v37 = vpop.permute.xlu0 %1235  ;;  %v3476_v29 = vpop.f32.mrf.mxu3 }
 0x1a4   : > { %v992_v56 = vpop.permute.xlu1 %991 }
 0x1a5   : > { %v994_v39 = vadd.f32 %v992_v56, %v989_v13 }
 0x1a7   : > { %v995_v48 = vadd.f32 %v3319_v49, %v994_v39 }
 0x1a9   : > { %2836 = vtanh.f32 %v995_v48  ;;  %1825 = vrot.lane.b32.xlu0 %v3127_v28, %s2963_s26  ;;  %v1155_v12 = vpop.permute.xlu2 %1154 }
 0x1aa   : > { %1656 = vrot.lane.b32.xlu2 %v617_v27, %s2963_s26 }
 0x1ab   : > { %1792 = vrot.lane.b32.xlu1 %v3399_v11, %s2962_s25  ;;  %v1071_v13 = vpop.permute.xlu0 %1070 }
 0x1ac   : > { %v1073_v56 = vadd.f32 %v1071_v13, %v1069_v51  ;;  %v1034_v39 = vpop.permute.xlu1 %1033 }
 0x1ad   : > { %v1036_v46 = vadd.f32 %v1034_v39, %v1031_v21 }
 0x1ae   : > { %v1078_v41 = vadd.f32 %v1076_v30, %v1073_v56  ;;  %v3490_v30 = vpop.f32.mrf.mxu3  ;;  %v1111_v56 = vadd.f32 %v3414_v40, %v3188_v45 }
 0x1af   : > { %v2837_v48 = vpop.eup %2836  ;;  %v1037_v43 = vadd.f32 %v3319_v49, %v1036_v46 }
 0x1b0   : > { %v997_v32 = vpack.c.bf16 %v2837_v48, %v2837_v48  ;;  %v1079_v27 = vadd.f32 %v3319_v49, %v1078_v41  ;;  %v2742_v48 = vld [vmem:[%s3796_s3 + $0x60] sm:$0xff] }
 0x1b1   : > { %2838 = vtanh.f32 %v1037_v43  ;;  %1829 = vrot.lane.b32.xlu0 %v3399_v11, %s2961_s23  ;;  %v3506_v41 = vpop.permute.xlu2 %1403  ;;  %v1153_v43 = vadd.f32 %v3395_v4, %v3199_v47  ;;  %1228 = vmatpush.bf16.msrb.mxu1 %v2742_v48 }
 0x1b2   : > { %2840 = vtanh.f32 %v1079_v27  ;;  %2498 = vmatmul.msk.bf16.vlgmr.msrb.gmra.mxu2 %vm728_vm1, %v997_v32  ;;  %1909 = vrot.lane.b32.xlu2 %v3147_v33, %s2963_s26 }
 0x1b3   : > { %1871 = vrot.lane.b32.xlu1 %v3412_v16, %s2961_s23  ;;  %v3514_v32 = vpop.permute.xlu0 %1319 }
 0x1b4   : > { %v1113_v22 = vpop.permute.xlu1 %1112 }
 0x1b5   : > { %v1115_v46 = vadd.f32 %v1113_v22, %v1111_v56  ;;  %v1157_v22 = vadd.f32 %v1155_v12, %v1153_v43 }
 0x1b6   : > { %v3501_v33 = vpop.f32.mrf.mxu3 }
 0x1b7   : > { %v2839_v51 = vpop.eup %2838 }
 0x1b8   : > { %v2841_v21 = vpop.eup %2840  ;;  %v1039_v13 = vpack.c.bf16 %v2839_v51, %v2839_v51 }
 0x1b9   : > { %v1081_v39 = vpack.c.bf16 %v2841_v21, %v2841_v21  ;;  %1994 = vrot.lane.b32.xlu0 %v3379_v10, %s2963_s26 }
 0x1ba   : > { %2505 = vmatmul.msk.bf16.vlgmr.msrb.gmra.mxu3 %vm728_vm1, %v1039_v13  ;;  %1913 = vrot.lane.b32.xlu2 %v3428_v50, %s2961_s23 }
 0x1bb   : > { %1876 = vrot.lane.b32.xlu1 %v3428_v50, %s2962_s25  ;;  %2512 = vmatmul.msk.bf16.vlgmr.msra.gmra.mxu1 %vm728_vm1, %v1081_v39  ;;  %v3532_v39 = vpop.permute.xlu0 %1361 }
 0x1bc   : > { %v1118_v45 = vpop.permute.xlu1 %1117 }
 0x1bd   : > { %v1120_v40 = vadd.f32 %v1118_v45, %v1115_v46 }
 0x1be   : > { %v3520_v27 = vpop.f32.mrf.mxu3 }
 0x1bf   : > { %v1121_v59 = vadd.f32 %v3319_v49, %v1120_v40  ;;  %v2743_v40 = vld [vmem:[%s3796_s3 + $0x68] sm:$0xff] }
 0x1c0   : > { %1270 = vmatpush.bf16.msrb.mxu2 %v2743_v40 }
 0x1c1   : > { %2842 = vtanh.f32 %v1121_v59  ;;  %1951 = vrot.lane.b32.xlu0 %v3367_v58, %s2963_s26 }
 0x1c2   : > { %1834 = vrot.lane.b32.xlu2 %v3412_v16, %s2962_s25 }
 0x1c3   : > { %1918 = vrot.lane.b32.xlu1 %v3444_v24, %s2962_s25 }
 0x1c4   : > { %v1160_v51 = vpop.permute.xlu1 %1159  ;;  %v1203_v21 = vpop.permute.xlu2 %1202 }
 0x1c5   : > { %v1162_v13 = vadd.f32 %v1160_v51, %v1157_v22 }
 0x1c6   : > { %v3530_v12 = vpop.f32.mrf.mxu3 }
 0x1c7   : > { %v2843_v47 = vpop.eup %2842  ;;  %v1163_v4 = vadd.f32 %v3319_v49, %v1162_v13 }
 0x1c8   : > { %v1123_v56 = vpack.c.bf16 %v2843_v47, %v2843_v47  ;;  %v2744_v47 = vld [vmem:[%s3796_s3 + $0x70] sm:$0xff] }
 0x1c9   : > { %2844 = vtanh.f32 %v1163_v4  ;;  %1956 = vrot.lane.b32.xlu0 %v3440_v14, %s2961_s23  ;;  %v1195_v14 = vadd.f32 %v3448_v44, %v3225_v57  ;;  %1312 = vmatpush.bf16.msrb.mxu3 %v2744_v47  ;;  %v2745_v44 = vld [vmem:[%s3796_s3 + $0x78] sm:$0xff] }
 0x1ca   : > { %2519 = vmatmul.msk.bf16.vlgmr.msra.gmra.mxu2 %vm728_vm1, %v1123_v56  ;;  %2036 = vrot.lane.b32.xlu2 %v3399_v11, %s2963_s26 }
 0x1cb   : > { %1998 = vrot.lane.b32.xlu1 %v3458_v19, %s2961_s23  ;;  %1354 = vmatpush.bf16.msra.mxu1 %v2745_v44 }
 0x1cc   : > { %v1282_v46 = vpop.permute.xlu2 %1281 }
 0x1ce   : > { %v676_v48 = vpop.f32.mrf.mxu3 }
 0x1cf   : > { %v2845_v45 = vpop.eup %2844 }
 0x1d0   : > { %v1165_v59 = vpack.c.bf16 %v2845_v45, %v2845_v45  ;;  %v1238_v45 = vadd.f32 %v3463_v37, %v3233_v61  ;;  %v2746_v37 = vld [vmem:[%s3796_s3 + $0x80] sm:$0xff] }
 0x1d1   : > { %2120 = vrot.lane.b32.xlu0 %v3428_v50, %s2963_s26  ;;  %1396 = vmatpush.bf16.msra.mxu2 %v2746_v37 }
 0x1d2   : > { %2526 = vmatmul.msk.bf16.vlgmr.msra.gmra.mxu3 %vm728_vm1, %v1165_v59  ;;  %2040 = vrot.lane.b32.xlu2 %v3476_v29, %s2961_s23 }
 0x1d3   : > { %2003 = vrot.lane.b32.xlu1 %v3476_v29, %s2962_s25  ;;  %v1198_v43 = vpop.permute.xlu0 %1197 }
 0x1d4   : > { %v1200_v22 = vadd.f32 %v1198_v43, %v1195_v14  ;;  %v3548_v51 = vpop.permute.xlu2 %1530 }
 0x1d6   : > { %v1205_v13 = vadd.f32 %v1203_v21, %v1200_v22  ;;  %v1280_v22 = vadd.f32 %v3450_v63, %v3247_v1 }
 0x1d8   : > { %v1206_v57 = vadd.f32 %v3319_v49, %v1205_v13  ;;  %v1322_v13 = vadd.f32 %v3514_v32, %v3263_v6  ;;  %v1284_v44 = vadd.f32 %v1282_v46, %v1280_v22 }
 0x1d9   : > { %2078 = vrot.lane.b32.xlu0 %v3412_v16, %s2963_s26 }
 0x1da   : > { %2846 = vtanh.f32 %v1206_v57  ;;  %1961 = vrot.lane.b32.xlu2 %v3458_v19, %s2962_s25  ;;  %v2747_v57 = vld [vmem:[%s3796_s3 + $0x88] sm:$0xff] }
 0x1db   : > { %2045 = vrot.lane.b32.xlu1 %v3490_v30, %s2962_s25  ;;  %v1446_v29 = vpop.permute.xlu0 %1445  ;;  %1438 = vmatpush.bf16.msra.mxu3 %v2747_v57 }
 0x1dc   : > { %v1240_v21 = vpop.permute.xlu1 %1239  ;;  %v1329_v4 = vpop.permute.xlu2 %1328 }
 0x1dd   : > { %v1242_v59 = vadd.f32 %v1240_v21, %v1238_v45 }
 0x1e0   : > { %v2847_v56 = vpop.eup %2846 }
 0x1e1   : > { %v1208_v40 = vpack.c.bf16 %v2847_v56, %v2847_v56  ;;  %2082 = vrot.lane.b32.xlu0 %v3490_v30, %s2961_s23 }
 0x1e2   : > { %2162 = vrot.lane.b32.xlu2 %v3444_v24, %s2963_s26  ;;  %v2748_v24 = vld [vmem:[%s3796_s3 + $0x90] sm:$0xff] }
 0x1e3   : > { %2124 = vrot.lane.b32.xlu1 %v3501_v33, %s2961_s23  ;;  %2533 = vmatmul.msk.bf16.vlgmr.msrb.gmra.mxu1 %vm728_vm1, %v1208_v40  ;;  %v3572_v19 = vpop.permute.xlu0 %1488 }
 0x1e4   : > { %v1245_v14 = vpop.permute.xlu1 %1244  ;;  %v3574_v48 = vpop.permute.xlu2 %1407  ;;  %1481 = vmatpush.bf16.msrb.mxu1 %v2748_v24 }
 0x1e5   : > { %v1247_v43 = vadd.f32 %v1245_v14, %v1242_v59  ;;  %v1448_v59 = vadd.f32 %v1446_v29, %v3323_v17 }
 0x1e7   : > { %v1248_v61 = vadd.f32 %v3319_v49, %v1247_v43 }
 0x1e8   : > { %v741_v30 = vpop.f32.mrf.mxu1 }
 0x1e9   : > { %2848 = vtanh.f32 %v1248_v61 }
 0x1ea   : > { %2166 = vrot.lane.b32.xlu2 %v3520_v27, %s2961_s23  ;;  %s2911_s23 = sshra.s32 %s2227_s16, 4  ;;  %s2912_s23 = int_to_ptr.hbm [resolvable:$true] %s2911_s23 }
 0x1eb   : > { %2129 = vrot.lane.b32.xlu1 %v3520_v27, %s2962_s25  ;;  %v1324_v47 = vpop.permute.xlu0 %1323  ;;  %s2913_s30 = scalar_lea.hbm %s2912_s23, 8  ;;  %p2918_p0 = scmp.lt.s32.totalorder %s2912_s23, %s3798_s5 }
 0x1ec   : > { %v1326_v21 = vadd.f32 %v1324_v47, %v1322_v13  ;;  %v3594_v56 = vpop.permute.xlu2 %1783  ;;  %v763_v1 = vpop.f32.mrf.mxu2  ;;  %v1364_v47 = vadd.f32 %v3532_v39, %v3275_v9  ;;  %v1491_v9 = vadd.f32 %v3572_v19, %v3337_v36  ;;  %p2914_p11 = scmp.ne.s32.totalorder %s2912_s23, %s2913_s30  ;;  %p2919_p1 = scmp.lt.s32.totalorder %s2917_s7, %s2913_s30 }
 0x1ed   : > { %v1287_v63 = vpop.permute.xlu1 %1286  ;;  %v764_v45 = vadd.f32 %v763_v1, %v741_v30  ;;  %v2749_v30 = vld [vmem:[%s3796_s3 + $0x98] sm:$0xff] }
 0x1ee   : > { %v1331_v6 = vadd.f32 %v1329_v4, %v1326_v21  ;;  %v1289_v32 = vadd.f32 %v1287_v63, %v1284_v44  ;;  %v1453_v4 = vadd.f32 %v3220_v54, %v1448_v59  ;;  %v2751_v54 = vld [vmem:[%s3796_s3 + $0xa8] sm:$0xff]  ;;  %p2915_p12 = pnand %p2914_p11, %p3032_p5  ;;  %p2920_p2 = por %p2919_p1, %p2918_p0 }
 0x1ef   : > { %v2849_v40 = vpop.eup %2848 }
 0x1f0   : > { %v1250_v27 = vpack.c.bf16 %v2849_v40, %v2849_v40  ;;  %v1332_v14 = vadd.f32 %v3319_v49, %v1331_v6  ;;  %v1290_v43 = vadd.f32 %v3319_v49, %v1289_v32  ;;  %v743_v61 = vpop.f32.mrf.mxu1  ;;  %v1458_v22 = vadd.f32 %v3216_v52, %v1453_v4  ;;  %p2916_p13 = pneg %p2915_p12 }
 0x1f1   : > { %v1495_v61 = vadd.f32 %v3223_v55, %v1491_v9 }
 0x1f2   : > { %2850 = vtanh.f32 %v1332_v14  ;;  %2540 = vmatmul.msk.bf16.vlgmr.msrb.gmra.mxu2 %vm728_vm1, %v1250_v27  ;;  %2087 = vrot.lane.b32.xlu2 %v3501_v33, %s2962_s25  ;;  %v1459_v52 = vadd.f32 %v3319_v49, %v1458_v22  ;;  %v1533_v22 = vadd.f32 %v3548_v51, %v3357_v53  ;;  %p2921_p3 = pnand %p2920_p2, %p2916_p13 }
 0x1f3   : > { %2852 = vtanh.f32 %v1290_v43  ;;  %2171 = vrot.lane.b32.xlu1 %v3530_v12, %s2962_s25  ;;  %v1573_v46 = vpop.permute.xlu0 %1572  ;;  %1523 = vmatpush.bf16.msrb.mxu2 %v2749_v30  ;;  %v2750_v12 = vld [vmem:[%s3796_s3 + $0xa0] sm:$0xff]  ;;  %v1406_v43 = vadd.f32 %v3506_v41, %v3297_v26  ;;  %s216_s25 = sand.u32 1, %s2951_s19  }
 0x1f4   : > { %v3605_v17 = vpop.permute.xlu2 %1787  ;;  %v765_v29 = vpop.f32.mrf.mxu2  ;;  %2854 = vtanh.f32 %v1459_v52  ;;  %v1575_v39 = vadd.f32 %v1573_v46, %v3370_v38  ;;  %v1500_v46 = vadd.f32 %v3230_v60, %v1495_v61  ;;  %v1537_v53 = vadd.f32 %v3239_v62, %v1533_v22  ;;  %v2753_v62 = vld [vmem:[%s3796_s3 + $0xb8] sm:$0xff]  ;;  %s2290_s10 = sshll.u32 %s216_s25, 3  ;;  %s2212_s17 = scalar_lea.sflag [#allocation3], %s216_s25 }
 0x1f5   : > { %v1366_v37 = vpop.permute.xlu1 %1365  ;;  %v1410_v29 = vadd.f32 %v3574_v48, %v1406_v43  ;;  %s218_s26 = scalar_lea.vmem [#allocation2], %s2290_s10 }
 0x1f6   : > { %v1368_v21 = vadd.f32 %v1366_v37, %v1364_v47  ;;  %v1501_v60 = vadd.f32 %v3319_v49, %v1500_v46  ;;  %s2224_s15 = sshll.u32 %s218_s26, 4  ;;  %s2225_s15 = int_to_ptr.vmem [resolvable:$true] %s2224_s15 }
 0x1f8   : > { %v2851_v24 = vpop.eup %2850 }
 0x1f9   : > { %v2853_v13 = vpop.eup %2852  ;;  %v1334_v33 = vpack.c.bf16 %v2851_v24, %v2851_v24 }
 0x1fa   : > { %v1292_v57 = vpack.c.bf16 %v2853_v13, %v2853_v13  ;;  %v2855_v30 = vpop.eup %2854 }
 0x1fb   : > { %2554 = vmatmul.msk.bf16.vlgmr.msra.gmra.mxu1 %vm728_vm1, %v1334_v33  ;;  %v1615_v44 = vpop.permute.xlu0 %1614  ;;  %v1461_v48 = vpack.c.bf16 %v2855_v30, %v2855_v30  ;;  %v2754_v33 = vld [vmem:[%s3796_s3 + $0xc0] sm:$0xff] }
 0x1fc   : > { %2547 = vmatmul.msk.bf16.vlgmr.msrb.gmra.mxu3 %vm728_vm1, %v1292_v57  ;;  %v3622_v1 = vpop.permute.xlu2 %1708  ;;  %1607 = vmatpush.bf16.msra.mxu1 %v2751_v54  ;;  %v1617_v52 = vadd.f32 %v1615_v44, %v3384_v31 }
 0x1fd   : > { %v1371_v63 = vpop.permute.xlu1 %1370  ;;  %v805_v6 = vpop.f32.mrf.mxu3  ;;  %1565 = vmatpush.bf16.msrb.mxu3 %v2750_v12 }
 0x1fe   : > { %v1373_v32 = vadd.f32 %v1371_v63, %v1368_v21  ;;  %v809_v40 = vadd.f32 %v805_v6, %v764_v45  ;;  %v1579_v45 = vadd.f32 %v3261_v5, %v1575_v39  ;;  %v2752_v5 = vld [vmem:[%s3796_s3 + $0xb0] sm:$0xff]  ;;  %v1542_v63 = vadd.f32 %v3255_v2, %v1537_v53 }
 0x200   : > { %v1374_v59 = vadd.f32 %v3319_v49, %v1373_v32  ;;  %v848_v27 = vpop.f32.mrf.mxu1  ;;  %v1584_v26 = vadd.f32 %v3257_v3, %v1579_v45  ;;  %v1543_v39 = vadd.f32 %v3319_v49, %v1542_v63  ;;  %v2760_v63 = vld [vmem:[%s3796_s3 + $0xf0] sm:$0xff] }
 0x201   : > { %v852_v14 = vadd.f32 %v848_v27, %v809_v40  ;;  %v1621_v40 = vadd.f32 %v3271_v7, %v1617_v52 }
 0x202   : > { %2856 = vtanh.f32 %v1374_v59  ;;  %v1585_v51 = vadd.f32 %v3319_v49, %v1584_v26 }
 0x203   : > { %v1699_v4 = vpop.permute.xlu0 %1698  ;;  %v1626_v61 = vadd.f32 %v3290_v15, %v1621_v40 }
 0x204   : > { %v1657_v37 = vpop.permute.xlu2 %1656  ;;  %v1701_v32 = vadd.f32 %v1699_v4, %v3087_v18 }
 0x205   : > { %v1413_v36 = vpop.permute.xlu1 %1412  ;;  %v807_v19 = vpop.f32.mrf.mxu3  ;;  %v1659_v7 = vadd.f32 %v1657_v37, %v3405_v34  ;;  %v1627_v30 = vadd.f32 %v3319_v49, %v1626_v61 }
 0x206   : > { %v1415_v38 = vadd.f32 %v1413_v36, %v1410_v29  ;;  %v2755_v29 = vld [vmem:[%s3796_s3 + $0xc8] sm:$0xff]  ;;  %v2757_v19 = vld [vmem:[%s3796_s3 + $0xd8] sm:$0xff] }
 0x207   : > { %v1663_v34 = vadd.f32 %v3273_v8, %v1659_v7 }
 0x208   : > { %v2857_v24 = vpop.eup %2856  ;;  %v1416_v55 = vadd.f32 %v3319_v49, %v1415_v38  ;;  %v850_v41 = vpop.f32.mrf.mxu1 }
 0x209   : > { %v1376_v13 = vpack.c.bf16 %v2857_v24, %v2857_v24  ;;  %v1668_v22 = vadd.f32 %v3308_v35, %v1663_v34 }
 0x20a   : > { %2858 = vtanh.f32 %v1416_v55  ;;  %v2756_v55 = vld [vmem:[%s3796_s3 + $0xd0] sm:$0xff] }
 0x20b   : > { %2561 = vmatmul.msk.bf16.vlgmr.msra.gmra.mxu2 %vm728_vm1, %v1376_v13  ;;  %2575 = vmatmul.msk.bf16.vlgmr.msrb.gmra.mxu1 %vm728_vm1, %v1461_v48  ;;  %v1704_v3 = vpop.permute.xlu0 %1703  ;;  %2860 = vtanh.f32 %v1501_v60  ;;  %v1744_v48 = vadd.f32 %v3245_v0, %v3094_v20  ;;  %v2758_v20 = vld [vmem:[%s3796_s3 + $0xe0] sm:$0xff] }
 0x20c   : > { %v3649_v12 = vpop.permute.xlu2 %1909  ;;  %1649 = vmatpush.bf16.msra.mxu2 %v2752_v5  ;;  %1734 = vmatpush.bf16.msrb.mxu1 %v2754_v33  ;;  %2862 = vtanh.f32 %v1585_v51  ;;  %v1706_v31 = vadd.f32 %v1704_v3, %v1701_v32  ;;  %v1669_v33 = vadd.f32 %v3319_v49, %v1668_v22 }
 0x20d   : > { %v1746_v54 = vpop.permute.xlu1 %1745  ;;  %v891_v47 = vpop.f32.mrf.mxu2  ;;  %2864 = vtanh.f32 %v1543_v39 }
 0x20e   : > { %v895_v57 = vadd.f32 %v891_v47, %v852_v14  ;;  %v1711_v4 = vadd.f32 %v3622_v1, %v1706_v31  ;;  %2866 = vtanh.f32 %v1627_v30  ;;  %v1748_v53 = vadd.f32 %v1746_v54, %v1744_v48  ;;  %v2761_v30 = vld [vmem:[%s3796_s3 + $0xf8] sm:$0xff] }
 0x210   : > { %v2859_v21 = vpop.eup %2858  ;;  %v1712_v1 = vadd.f32 %v3319_v49, %v1711_v4 }
 0x211   : > { %v1418_v6 = vpack.c.bf16 %v2859_v21, %v2859_v21  ;;  %v2861_v2 = vpop.eup %2860 }
 0x212   : > { %v2863_v14 = vpop.eup %2862  ;;  %v1503_v45 = vpack.c.bf16 %v2861_v2, %v2861_v2  ;;  %2868 = vtanh.f32 %v1712_v1  ;;  %v3803_v1 = vld [vmem:[#allocation5_spill] sm:$0xff] }
 0x213   : > { %2568 = vmatmul.msk.bf16.vlgmr.msra.gmra.mxu3 %vm728_vm1, %v1418_v6  ;;  %v3659_v9 = vpop.permute.xlu0 %1867  ;;  %v1587_v36 = vpack.c.bf16 %v2863_v14, %v2863_v14  ;;  %v2865_v46 = vpop.eup %2864  ;;  %2870 = vtanh.f32 %v1669_v33  ;;  %v1786_v6 = vadd.f32 %v3594_v56, %v3105_v23 }
 0x214   : > { %v3662_v44 = vpop.permute.xlu2 %1913  ;;  %1691 = vmatpush.bf16.msra.mxu3 %v2753_v62  ;;  %v1545_v41 = vpack.c.bf16 %v2865_v46, %v2865_v46  ;;  %v2867_v3 = vpop.eup %2866  ;;  %v1870_v56 = vadd.f32 %v3659_v9, %v3127_v28 }
 0x215   : > { %v1751_v59 = vpop.permute.xlu1 %1750  ;;  %v893_v27 = vpop.f32.mrf.mxu2  ;;  %v1629_v0 = vpack.c.bf16 %v2867_v3, %v2867_v3  ;;  %v1790_v2 = vadd.f32 %v3605_v17, %v1786_v6 }
 0x216   : > { %v934_v43 = vpop.f32.mrf.mxu3  ;;  %v2759_v27 = vld [vmem:[%s3796_s3 + $0xe8] sm:$0xff] }
 0x217   : > { %v938_v18 = vadd.f32 %v934_v43, %v895_v57  ;;  %v1753_v57 = vadd.f32 %v1751_v59, %v1748_v53 }
 0x218   : > { %v2869_v47 = vpop.eup %2868 }
 0x219   : > { %v1714_v21 = vpack.c.bf16 %v2869_v47, %v2869_v47  ;;  %v1754_v62 = vadd.f32 %v3319_v49, %v1753_v57  ;;  %v2871_v31 = vpop.eup %2870 }
 0x21a   : > { %v1671_v14 = vpack.c.bf16 %v2871_v31, %v2871_v31 }
 0x21b   : > { %2582 = vmatmul.msk.bf16.vlgmr.msrb.gmra.mxu2 %vm728_vm1, %v1503_v45  ;;  %2596 = vmatmul.msk.bf16.vlgmr.msra.gmra.mxu1 %vm728_vm1, %v1587_v36  ;;  %v1826_v15 = vpop.permute.xlu0 %1825  ;;  %2872 = vtanh.f32 %v1754_v62 }
 0x21c   : > { %v1835_v37 = vpop.permute.xlu2 %1834  ;;  %1776 = vmatpush.bf16.msrb.mxu2 %v2755_v29  ;;  %1860 = vmatpush.bf16.msra.mxu1 %v2757_v19  ;;  %v1828_v8 = vadd.f32 %v1826_v15, %v3116_v25 }
 0x21d   : > { %v1793_v38 = vpop.permute.xlu1 %1792 }
 0x21e   : > { %v936_v24 = vpop.f32.mrf.mxu3  ;;  %v1795_v59 = vadd.f32 %v1793_v38, %v1790_v2 }
 0x220   : > { %v977_v26 = vpop.f32.mrf.mxu1  ;;  %v1796_v43 = vadd.f32 %v3319_v49, %v1795_v59 }
 0x221   : > { %v981_v5 = vadd.f32 %v977_v26, %v938_v18  ;;  %v2873_v61 = vpop.eup %2872 }
 0x222   : > { %v1756_v15 = vpack.c.bf16 %v2873_v61, %v2873_v61 }
 0x223   : > { %2589 = vmatmul.msk.bf16.vlgmr.msrb.gmra.mxu3 %vm728_vm1, %v1545_v41  ;;  %v1830_v13 = vpop.permute.xlu0 %1829 }
 0x224   : > { %v1832_v60 = vadd.f32 %v1830_v13, %v1828_v8  ;;  %v3687_v35 = vpop.permute.xlu2 %2036  ;;  %1818 = vmatpush.bf16.msrb.mxu3 %v2756_v55 }
 0x225   : > { %v1872_v51 = vpop.permute.xlu1 %1871 }
 0x226   : > { %v1837_v52 = vadd.f32 %v1835_v37, %v1832_v60  ;;  %v1874_v4 = vadd.f32 %v1872_v51, %v1870_v56  ;;  %v1912_v37 = vadd.f32 %v3649_v12, %v3803_v1  ;;  %v2762_v12 = vld [vmem:[%s3796_s3 + $0x100] sm:$0xff]  ;;  %v2765_v56 = vld [vmem:[%s3796_s3 + $0x118] sm:$0xff] }
 0x228   : > { %v979_v25 = vpop.f32.mrf.mxu1  ;;  %v1838_v32 = vadd.f32 %v3319_v49, %v1837_v52  ;;  %v1916_v55 = vadd.f32 %v3662_v44, %v1912_v37  ;;  %v2763_v44 = vld [vmem:[%s3796_s3 + $0x108] sm:$0xff] }
 0x22a   : > { %2874 = vtanh.f32 %v1838_v32 }
 0x22b   : > { %2603 = vmatmul.msk.bf16.vlgmr.msra.gmra.mxu2 %vm728_vm1, %v1629_v0  ;;  %v1995_v54 = vpop.permute.xlu0 %1994  ;;  %2617 = vmatmul.msk.bf16.vlgmr.msrb.gmra.mxu1 %vm728_vm1, %v1714_v21  ;;  %2876 = vtanh.f32 %v1796_v43 }
 0x22c   : > { %v3701_v40 = vpop.permute.xlu2 %2040  ;;  %1902 = vmatpush.bf16.msra.mxu2 %v2758_v20  ;;  %1987 = vmatpush.bf16.msrb.mxu1 %v2760_v63  ;;  %v1997_v51 = vadd.f32 %v1995_v54, %v3367_v58  ;;  %v2764_v63 = vld [vmem:[%s3796_s3 + $0x110] sm:$0xff]  ;;  %v2039_v54 = vadd.f32 %v3687_v35, %v3379_v10  ;;  %v2896_v35 = vld [vmem:[%s3795_s2] ss:$0 sm:$0xff] }
 0x22d   : > { %v1877_v39 = vpop.permute.xlu1 %1876 }
 0x22e   : > { %v1879_v36 = vadd.f32 %v1877_v39, %v1874_v4 }
 0x230   : > { %v2875_v7 = vpop.eup %2874  ;;  %v1880_v38 = vadd.f32 %v3319_v49, %v1879_v36 }
 0x231   : > { %v1840_v34 = vpack.c.bf16 %v2875_v7, %v2875_v7  ;;  %v2877_v26 = vpop.eup %2876 }
 0x232   : > { %2878 = vtanh.f32 %v1880_v38  ;;  %v1798_v60 = vpack.c.bf16 %v2877_v26, %v2877_v26 }
 0x233   : > { %2610 = vmatmul.msk.bf16.vlgmr.msra.gmra.mxu3 %vm728_vm1, %v1671_v14  ;;  %v1952_v23 = vpop.permute.xlu0 %1951 }
 0x234   : > { %1944 = vmatpush.bf16.msra.mxu3 %v2759_v27  ;;  %v1962_v29 = vpop.permute.xlu2 %1961  ;;  %v1954_v28 = vadd.f32 %v1952_v23, %v3348_v42  ;;  %v2043_v27 = vadd.f32 %v3701_v40, %v2039_v54 }
 0x235   : > { %v1919_v18 = vpop.permute.xlu1 %1918  ;;  %v1019_v17 = vpop.f32.mrf.mxu2 }
 0x236   : > { %v1023_v45 = vadd.f32 %v1019_v17, %v981_v5  ;;  %v1921_v8 = vadd.f32 %v1919_v18, %v1916_v55 }
 0x238   : > { %v1103_v19 = vpop.f32.mrf.mxu1  ;;  %v1922_v47 = vadd.f32 %v3319_v49, %v1921_v8  ;;  %v2879_v52 = vpop.eup %2878 }
 0x239   : > { %v1882_v62 = vpack.c.bf16 %v2879_v52, %v2879_v52 }
 0x23b   : > { %2624 = vmatmul.msk.bf16.vlgmr.msrb.gmra.mxu2 %vm728_vm1, %v1756_v15  ;;  %v1957_v9 = vpop.permute.xlu0 %1956  ;;  %2638 = vmatmul.msk.bf16.vlgmr.msra.gmra.mxu1 %vm728_vm1, %v1840_v34 }
 0x23c   : > { %v1959_v46 = vadd.f32 %v1957_v9, %v1954_v28  ;;  %2029 = vmatpush.bf16.msrb.mxu2 %v2761_v30  ;;  %v3722_v13 = vpop.permute.xlu2 %2162  ;;  %2113 = vmatpush.bf16.msra.mxu1 %v2763_v44 }
 0x23d   : > { %v1999_v24 = vpop.permute.xlu1 %1998  ;;  %v1021_v22 = vpop.f32.mrf.mxu2  ;;  %v2165_v55 = vadd.f32 %v3722_v13, %v3428_v50 }
 0x23e   : > { %v1964_v41 = vadd.f32 %v1962_v29, %v1959_v46  ;;  %v1061_v5 = vpop.f32.mrf.mxu3  ;;  %v2001_v25 = vadd.f32 %v1999_v24, %v1997_v51 }
 0x23f   : > { %v1065_v42 = vadd.f32 %v1061_v5, %v1023_v45 }
 0x240   : > { %v1965_v48 = vadd.f32 %v3319_v49, %v1964_v41  ;;  %v1105_v33 = vpop.f32.mrf.mxu1 }
 0x241   : > { %v1107_v3 = vadd.f32 %v1103_v19, %v1065_v42 }
 0x242   : > { %2880 = vtanh.f32 %v1965_v48 }
 0x243   : > { %2631 = vmatmul.msk.bf16.vlgmr.msrb.gmra.mxu3 %vm728_vm1, %v1798_v60  ;;  %v2121_v53 = vpop.permute.xlu0 %2120  ;;  %2882 = vtanh.f32 %v1922_v47 }
 0x244   : > { %2071 = vmatpush.bf16.msrb.mxu3 %v2762_v12  ;;  %v2167_v32 = vpop.permute.xlu2 %2166  ;;  %v2123_v30 = vadd.f32 %v2121_v53, %v3412_v16 }
 0x245   : > { %v2004_v57 = vpop.permute.xlu1 %2003  ;;  %v2169_v16 = vadd.f32 %v2167_v32, %v2165_v55 }
 0x246   : > { %v1063_v20 = vpop.f32.mrf.mxu3  ;;  %v2006_v21 = vadd.f32 %v2004_v57, %v2001_v25 }
 0x248   : > { %v2881_v0 = vpop.eup %2880  ;;  %v2007_v39 = vadd.f32 %v3319_v49, %v2006_v21 }
 0x249   : > { %v1967_v6 = vpack.c.bf16 %v2881_v0, %v2881_v0  ;;  %v2883_v59 = vpop.eup %2882 }
 0x24a   : > { %2884 = vtanh.f32 %v2007_v39  ;;  %v1924_v43 = vpack.c.bf16 %v2883_v59, %v2883_v59 }
 0x24b   : > { %2645 = vmatmul.msk.bf16.vlgmr.msra.gmra.mxu2 %vm728_vm1, %v1882_v62  ;;  %v2079_v58 = vpop.permute.xlu0 %2078  ;;  %2659 = vmatmul.msk.bf16.vlgmr.msrb.gmra.mxu1 %vm728_vm1, %v1967_v6 }
 0x24c   : > { %2155 = vmatpush.bf16.msra.mxu2 %v2764_v63  ;;  %v2081_v61 = vadd.f32 %v2079_v58, %v3399_v11  ;;  %v2088_v49 = vpop.permute.xlu2 %2087 }
 0x24d   : > { %v2046_v31 = vpop.permute.xlu1 %2045  ;;  %v1145_v2 = vpop.f32.mrf.mxu2 }
 0x24e   : > { %v1149_v14 = vadd.f32 %v1145_v2, %v1107_v3  ;;  %v2048_v23 = vadd.f32 %v2046_v31, %v2043_v27 }
 0x250   : > { %v2049_v18 = vadd.f32 %v2896_v35, %v2048_v23  ;;  %v2885_v4 = vpop.eup %2884 }
 0x251   : > { %v2009_v11 = vpack.c.bf16 %v2885_v4, %v2885_v4 }
 0x252   : > { %2886 = vtanh.f32 %v2049_v18 }
 0x253   : > { %2652 = vmatmul.msk.bf16.vlgmr.msra.gmra.mxu3 %vm728_vm1, %v1924_v43  ;;  %v2083_v10 = vpop.permute.xlu0 %2082 }
 0x254   : > { %v2085_v40 = vadd.f32 %v2083_v10, %v2081_v61  ;;  %2197 = vmatpush.bf16.msra.mxu3 %v2765_v56 }
 0x255   : > { %v2125_v17 = vpop.permute.xlu1 %2124  ;;  %v1147_v7 = vpop.f32.mrf.mxu2 }
 0x256   : > { %v2090_v29 = vadd.f32 %v2088_v49, %v2085_v40  ;;  %v1187_v45 = vpop.f32.mrf.mxu3  ;;  %v2127_v15 = vadd.f32 %v2125_v17, %v2123_v30 }
 0x257   : > { %v1191_v36 = vadd.f32 %v1187_v45, %v1149_v14 }
 0x258   : > { %v2091_v19 = vadd.f32 %v2896_v35, %v2090_v29  ;;  %v2887_v28 = vpop.eup %2886 }
 0x259   : > { %v2051_v24 = vpack.c.bf16 %v2887_v28, %v2887_v28 }
 0x25a   : > { %2888 = vtanh.f32 %v2091_v19 }
 0x25b   : > { %2666 = vmatmul.msk.bf16.vlgmr.msrb.gmra.mxu2 %vm728_vm1, %v2009_v11 }
 0x25d   : > { %v2130_v34 = vpop.permute.xlu1 %2129 }
 0x25e   : > { %v2132_v9 = vadd.f32 %v2130_v34, %v2127_v15  ;;  %v1189_v1 = vpop.f32.mrf.mxu3 }
 0x260   : > { %v2889_v37 = vpop.eup %2888  ;;  %v2133_v38 = vadd.f32 %v2896_v35, %v2132_v9  ;;  %v1230_v46 = vpop.f32.mrf.mxu1 }
 0x261   : > { %v2093_v22 = vpack.c.bf16 %v2889_v37, %v2889_v37  ;;  %v1234_v26 = vadd.f32 %v1230_v46, %v1191_v36 }
 0x262   : > { %2890 = vtanh.f32 %v2133_v38 }
 0x263   : > { %2673 = vmatmul.msk.bf16.vlgmr.msrb.gmra.mxu3 %vm728_vm1, %v2051_v24  ;;  %2680 = vmatmul.msk.bf16.vlgmr.msra.gmra.mxu1 %vm728_vm1, %v2093_v22 }
 0x265   : > { %v2172_v41 = vpop.permute.xlu1 %2171 }
 0x266   : > { %v2174_v5 = vadd.f32 %v2172_v41, %v2169_v16 }
 0x268   : > { %v2891_v42 = vpop.eup %2890  ;;  %v2175_v8 = vadd.f32 %v2896_v35, %v2174_v5  ;;  %v1232_v48 = vpop.f32.mrf.mxu1 }
 0x269   : > { %v2135_v33 = vpack.c.bf16 %v2891_v42, %v2891_v42 }
 0x26a   : > { %2892 = vtanh.f32 %v2175_v8 }
 0x26b   : > { %2687 = vmatmul.msk.bf16.vlgmr.msra.gmra.mxu2 %vm728_vm1, %v2135_v33 }
 0x270   : > { %v2893_v12 = vpop.eup %2892 }
 0x271   : > { %v2177_v60 = vpack.c.bf16 %v2893_v12, %v2893_v12 }
 0x273   : > { %2694 = vmatmul.msk.bf16.vlgmr.msra.gmra.mxu3 %vm728_vm1, %v2177_v60 }
 0x275   : > { %v1272_v50 = vpop.f32.mrf.mxu2 }
 0x276   : > { %v1276_v13 = vadd.f32 %v1272_v50, %v1234_v26 }
 0x278   : > { %v1356_v3 = vpop.f32.mrf.mxu1 }
 0x27d   : > { %v1274_v44 = vpop.f32.mrf.mxu2 }
 0x27f   : > { %v1314_v53 = vpop.f32.mrf.mxu3 }
 0x280   : > { %v1318_v51 = vadd.f32 %v1314_v53, %v1276_v13  ;;  %v1358_v47 = vpop.f32.mrf.mxu1  ;;  %v2821_v13 = vld [vmem:[%s3797_s4] ss:$0 sm:$0xff] }
 0x282   : > { %v1360_v57 = vadd.f32 %v1356_v3, %v1318_v51 }
 0x287   : > { %v1316_v52 = vpop.f32.mrf.mxu3 }
 0x288   : > { %v1483_v25 = vpop.f32.mrf.mxu1 }
 0x28e   : > { %v1398_v20 = vpop.f32.mrf.mxu2 }
 0x28f   : > { %v1402_v0 = vadd.f32 %v1398_v20, %v1360_v57 }
 0x290   : > { %v1485_v21 = vpop.f32.mrf.mxu1 }
 0x296   : > { %v1400_v63 = vpop.f32.mrf.mxu2  ;;  %v1440_v62 = vpop.f32.mrf.mxu3 }
 0x297   : > { %v1444_v6 = vadd.f32 %v1440_v62, %v1402_v0 }
 0x298   : > { %v1609_v32 = vpop.f32.mrf.mxu1 }
 0x299   : > { %v1487_v58 = vadd.f32 %v1483_v25, %v1444_v6 }
 0x29e   : > { %v1442_v54 = vpop.f32.mrf.mxu3  ;;  %v1525_v39 = vpop.f32.mrf.mxu2 }
 0x29f   : > { %v1529_v2 = vadd.f32 %v1525_v39, %v1487_v58 }
 0x2a0   : > { %v1611_v31 = vpop.f32.mrf.mxu1 }
 0x2a6   : > { %v1527_v59 = vpop.f32.mrf.mxu2  ;;  %v1567_v27 = vpop.f32.mrf.mxu3 }
 0x2a7   : > { %v1571_v14 = vadd.f32 %v1567_v27, %v1529_v2 }
 0x2a8   : > { %v1736_v23 = vpop.f32.mrf.mxu1 }
 0x2a9   : > { %v1613_v56 = vadd.f32 %v1609_v32, %v1571_v14 }
 0x2ae   : > { %v1569_v43 = vpop.f32.mrf.mxu3  ;;  %v1651_v61 = vpop.f32.mrf.mxu2 }
 0x2af   : > { %v1655_v30 = vadd.f32 %v1651_v61, %v1613_v56 }
 0x2b0   : > { %v1738_v10 = vpop.f32.mrf.mxu1 }
 0x2b6   : > { %v1653_v49 = vpop.f32.mrf.mxu2  ;;  %v1693_v35 = vpop.f32.mrf.mxu3 }
 0x2b7   : > { %v1697_v28 = vadd.f32 %v1693_v35, %v1655_v30 }
 0x2b8   : > { %v1862_v18 = vpop.f32.mrf.mxu1 }
 0x2b9   : > { %v1740_v9 = vadd.f32 %v1736_v23, %v1697_v28 }
 0x2be   : > { %v1695_v40 = vpop.f32.mrf.mxu3  ;;  %v1778_v17 = vpop.f32.mrf.mxu2 }
 0x2bf   : > { %v1782_v1 = vadd.f32 %v1778_v17, %v1740_v9 }
 0x2c0   : > { %v1864_v7 = vpop.f32.mrf.mxu1 }
 0x2c6   : > { %v1780_v4 = vpop.f32.mrf.mxu2  ;;  %v1820_v29 = vpop.f32.mrf.mxu3 }
 0x2c7   : > { %v1824_v46 = vadd.f32 %v1820_v29, %v1782_v1 }
 0x2c8   : > { %v1989_v45 = vpop.f32.mrf.mxu1 }
 0x2c9   : > { %v1866_v22 = vadd.f32 %v1862_v18, %v1824_v46 }
 0x2ce   : > { %v1822_v36 = vpop.f32.mrf.mxu3  ;;  %v1904_v19 = vpop.f32.mrf.mxu2 }
 0x2cf   : > { %v1908_v26 = vadd.f32 %v1904_v19, %v1866_v22 }
 0x2d0   : > { %v1991_v11 = vpop.f32.mrf.mxu1 }
 0x2d6   : > { %v1906_v15 = vpop.f32.mrf.mxu2  ;;  %v1946_v34 = vpop.f32.mrf.mxu3 }
 0x2d7   : > { %v1950_v41 = vadd.f32 %v1946_v34, %v1908_v26 }
 0x2d9   : > { %v1993_v42 = vadd.f32 %v1989_v45, %v1950_v41 }
 0x2de   : > { %v1948_v37 = vpop.f32.mrf.mxu3  ;;  %v2031_v38 = vpop.f32.mrf.mxu2 }
 0x2df   : > { %v2035_v8 = vadd.f32 %v2031_v38, %v1993_v42 }
 0x2e0   : > { %v2115_v24 = vpop.f32.mrf.mxu1 }
 0x2e6   : > { %v2033_v55 = vpop.f32.mrf.mxu2  ;;  %v2073_v16 = vpop.f32.mrf.mxu3 }
 0x2e7   : > { %v2077_v12 = vadd.f32 %v2073_v16, %v2035_v8 }
 0x2e8   : > { %v2117_v5 = vpop.f32.mrf.mxu1 }
 0x2e9   : > { %v2119_v60 = vadd.f32 %v2115_v24, %v2077_v12 }
 0x2ee   : > { %v2075_v48 = vpop.f32.mrf.mxu3  ;;  %v2157_v33 = vpop.f32.mrf.mxu2 }
 0x2ef   : > { %v2161_v50 = vadd.f32 %v2157_v33, %v2119_v60 }
 0x2f6   : > { %v2159_v3 = vpop.f32.mrf.mxu2  ;;  %v2199_v44 = vpop.f32.mrf.mxu3 }
 0x2f7   : > { %v2203_v53 = vadd.f32 %v2199_v44, %v2161_v50 }
 0x2f9   : > { %v2208_v51 = vadd.f32 %v2821_v13, %v2203_v53 }
 0x2fb   : > { %2894 = vtanh.f32 %v2208_v51 }
 0x2fe   : > { %v2201_v47 = vpop.f32.mrf.mxu3 }
 0x301   : > { %v2895_v57 = vpop.eup %2894 }
 0x302   : > { %2210 = vst [vmem:[%s218_s26] sm:$0xff] %v2895_v57 }
 0x303   : > { %2924 = shalt.err (!%p2921_p3)
}
 0x304   : > { %2778 = dma.vmem_to_hbm [thread:$0]  (%p3032_p5), %s2225_s15, 128, %s2227_s16, %s2212_s17  }
 0x305 PF: > { %p2784_p4 = scmp.ge.s32.totalorder %s2959_s21, 2  ;;  %s2238_s25 = sand.u32 1, %s2947_s18  }
 0x306   : > { %s2239_s10 = scalar_lea.sflag [#allocation3], %s2238_s25 }
 0x307   : > { %p2781_p7 = pnand %p2784_p4, %p3036_p6 }
 0x309   : > { %p2782_p8 = pneg %p2781_p7 }
 0x30b   : > { %2942 = dma.done.wait (%p2782_p8), %s2239_s10, 128  }
 0x30c   : > { %2944 = vsyncadd (%p2782_p8), %s2239_s10, 4294967168  ;;  %p15_p9 = scmp.ge.s32.totalorder %s3019_s24, 4   ;;  %s3804_s18 = smov %s2951_s19 }
 0x30d   : > { %s3805_s19 = smov %s2955_s20  ;;  %s3806_s20 = smov %s3030_s27 }
 0x30e   : > { %s3807_s21 = smov %s3019_s24  ;;  %17 = sbr.rel (!%p15_p9) target bundleno = 3 (0x3), region = 110 }
 0x313   :  { %2245 = vsyncpa [#allocation3], 1 }
 0x314   :  { %2247 = vsyncpa [#allocation3 + $0x1], 1 }

</bundles_post_ra>
